<compile_context>
chip_gen: v5e
topology: v5e:2x2
jax: 0.10.0
libtpu: 0.0.40
codegen_flags: <defaults>
</compile_context>

<pallas_src>
import functools

import jax
import jax.numpy as jnp
from jax.experimental import pallas as pl
from jax.experimental.pallas import tpu as pltpu

# Use the same matmul precision inside the Pallas kernel and in the XLA
# reference so the correctness check compares like-for-like f32 math.
jax.config.update("jax_default_matmul_precision", "highest")

LN_EPS = 1e-12  # BertConfig.layer_norm_eps default


def _mhta_kernel(q_ref, k_ref, m_ref, w_ref, p_ref, out_ref, qproj_ref, *,
                 head_num, head_dim, scale, ln_eps, residual):
    # blocks:
    #   q_ref  (1, Qn, H)      k_ref (1, 1, Tn, H)   m_ref (1, 1, 1, Tn)
    #   w_ref  (4, H, H)       p_ref (6, H)
    #   out_ref (1, 1, Qn, H)  qproj_ref VMEM (Qn, H) scratch
    s_idx = pl.program_id(1)

    bq = p_ref[0:1, :]
    bk = p_ref[1:2, :]
    bv = p_ref[2:3, :]
    bo = p_ref[3:4, :]
    gamma = p_ref[4:5, :]
    beta = p_ref[5:6, :]

    # Q projection depends only on the batch index -> compute it once per
    # batch (s is the inner "arbitrary" grid axis, so s == 0 fires exactly
    # once per b before any other s for that b).
    @pl.when(s_idx == 0)
    def _():
        qproj_ref[...] = (
            jnp.dot(q_ref[0], w_ref[0], preferred_element_type=jnp.float32)
            + bq)

    qp = qproj_ref[...]                                          # (Qn, H)
    kt = k_ref[0, 0]                                             # (Tn, H)
    kp = jnp.dot(kt, w_ref[1], preferred_element_type=jnp.float32) + bk
    vp = jnp.dot(kt, w_ref[2], preferred_element_type=jnp.float32) + bv
    wo = w_ref[3]                                                # (H, H)

    mask_bias = m_ref[0, 0] * (-10000.0)                         # (1, Tn)

    acc = None
    for h in range(head_num):
        lo = h * head_dim
        hi = lo + head_dim
        qh = qp[:, lo:hi]                                        # (Qn, Dh)
        kh = kp[:, lo:hi]                                        # (Tn, Dh)
        vh = vp[:, lo:hi]                                        # (Tn, Dh)

        # scores[q, t] = sum_d qh[q, d] * kh[t, d]  (last-dim contraction)
        sc = jax.lax.dot_general(
            qh, kh, (((1,), (1,)), ((), ())),
            preferred_element_type=jnp.float32) * scale          # (Qn, Tn)
        sc = sc + mask_bias

        # numerically stable softmax over the token dimension
        sc = sc - jnp.max(sc, axis=-1, keepdims=True)
        p = jnp.exp(sc)
        p = p / jnp.sum(p, axis=-1, keepdims=True)

        ctx_h = jnp.dot(p, vh, preferred_element_type=jnp.float32)  # (Qn, Dh)
        # Fold the per-head output-projection slice in directly:
        #   concat_h(ctx_h) @ Wo == sum_h ctx_h @ Wo[h*Dh:(h+1)*Dh, :]
        oh = jnp.dot(ctx_h, wo[lo:hi, :], preferred_element_type=jnp.float32)
        acc = oh if acc is None else acc + oh

    out = acc + bo                                               # (Qn, H)
    if residual:
        out = out + q_ref[0]

    mu = jnp.mean(out, axis=-1, keepdims=True)
    var = jnp.mean(jnp.square(out - mu), axis=-1, keepdims=True)
    out = (out - mu) * jax.lax.rsqrt(var + ln_eps) * gamma + beta

    out_ref[0, 0] = out


def multi_head_token_attention(ini_q, ini_k, mask, params, *, head_num,
                               residual=False, ln_eps=LN_EPS):
    """ini_q [B,Qn,H], ini_k [B,Sn,Tn,H], mask [B,Sn,Tn] -> [B,Qn,Sn,H]."""
    wq, bq, wk, bk, wv, bv, wo, bo, gamma, beta = params
    B, Qn, H = ini_q.shape
    _, Sn, Tn, _ = ini_k.shape
    assert H % head_num == 0
    head_dim = H // head_num
    scale = 1.0 / (head_dim ** 0.5)

    # Pack constant parameters: one DMA each, constant block index across grid.
    w_all = jnp.stack([wq, wk, wv, wo], axis=0)                   # (4, H, H)
    vec_all = jnp.stack([bq, bk, bv, bo, gamma, beta], axis=0)    # (6, H)
    mask4 = mask.reshape(B, Sn, 1, Tn)   # last two block dims == full dims

    kernel = functools.partial(
        _mhta_kernel, head_num=head_num, head_dim=head_dim, scale=scale,
        ln_eps=ln_eps, residual=residual)

    grid_spec = pltpu.PrefetchScalarGridSpec(
        num_scalar_prefetch=0,
        grid=(B, Sn),
        in_specs=[
            pl.BlockSpec((1, Qn, H), lambda b, s: (b, 0, 0)),         # ini_q
            pl.BlockSpec((1, 1, Tn, H), lambda b, s: (b, s, 0, 0)),   # ini_k
            pl.BlockSpec((1, 1, 1, Tn), lambda b, s: (b, s, 0, 0)),   # mask
            pl.BlockSpec((4, H, H), lambda b, s: (0, 0, 0)),          # weights
            pl.BlockSpec((6, H), lambda b, s: (0, 0)),                # vectors
        ],
        out_specs=pl.BlockSpec((1, 1, Qn, H), lambda b, s: (b, s, 0, 0)),
        scratch_shapes=[pltpu.VMEM((Qn, H), jnp.float32)],            # Q proj
    )

    out_bsqh = pl.pallas_call(
        kernel,
        out_shape=jax.ShapeDtypeStruct((B, Sn, Qn, H), jnp.float32),
        grid_spec=grid_spec,
        compiler_params=pltpu.CompilerParams(
            dimension_semantics=("parallel", "arbitrary")),
    )(ini_q, ini_k, mask4, w_all, vec_all)

    # [B, Sn, Qn, H] -> [B, Qn, Sn, H] (PyTorch layout), done in XLA.
    return jnp.transpose(out_bsqh, (0, 2, 1, 3))


def _reference(ini_q, ini_k, mask, params, head_num, residual=False,
               ln_eps=LN_EPS):
    wq, bq, wk, bk, wv, bv, wo, bo, gamma, beta = params
    B, Qn, H = ini_q.shape
    _, Sn, Tn, _ = ini_k.shape
    Dh = H // head_num
    scale = 1.0 / Dh ** 0.5
    q = (ini_q @ wq + bq).reshape(B, Qn, head_num, Dh)
    k = (ini_k @ wk + bk).reshape(B, Sn, Tn, head_num, Dh)
    v = (ini_k @ wv + bv).reshape(B, Sn, Tn, head_num, Dh)
    scores = jnp.einsum('bqhd,bsthd->bhqst', q, k) * scale
    scores = scores + mask.reshape(B, 1, 1, Sn, Tn) * (-10000.0)
    alpha = jax.nn.softmax(scores, axis=-1)
    res = jnp.einsum('bhqst,bsthd->bqshd', alpha, v).reshape(B, Qn, Sn, H)
    res = res @ wo + bo
    if residual:
        res = res + ini_q[:, :, None, :]
    mu = jnp.mean(res, axis=-1, keepdims=True)
    var = jnp.mean(jnp.square(res - mu), axis=-1, keepdims=True)
    return (res - mu) * jax.lax.rsqrt(var + ln_eps) * gamma + beta


def _init_params(key, hidden):
    ks = jax.random.split(key, 8)
    sc = 1.0 / jnp.sqrt(hidden)
    wq = jax.random.normal(ks[0], (hidden, hidden), jnp.float32) * sc
    bq = jax.random.normal(ks[1], (hidden,), jnp.float32) * 0.02
    wk = jax.random.normal(ks[2], (hidden, hidden), jnp.float32) * sc
    bk = jax.random.normal(ks[3], (hidden,), jnp.float32) * 0.02
    wv = jax.random.normal(ks[4], (hidden, hidden), jnp.float32) * sc
    bv = jax.random.normal(ks[5], (hidden,), jnp.float32) * 0.02
    wo = jax.random.normal(ks[6], (hidden, hidden), jnp.float32) * sc
    bo = jax.random.normal(ks[7], (hidden,), jnp.float32) * 0.02
    gamma = jnp.ones((hidden,), jnp.float32)
    beta = jnp.zeros((hidden,), jnp.float32)
    return (wq, bq, wk, bk, wv, bv, wo, bo, gamma, beta)


if __name__ == "__main__":
    B, Qn, Sn, Tn, H, HEADS = 2, 4, 3, 8, 32, 4
    root = jax.random.PRNGKey(0)
    k_q, k_k, k_m, k_p = jax.random.split(root, 4)

    params = _init_params(k_p, H)
    ini_q = jax.random.normal(k_q, (B, Qn, H), jnp.float32)
    ini_k = jax.random.normal(k_k, (B, Sn, Tn, H), jnp.float32)
    mask = jax.random.bernoulli(k_m, 0.25, (B, Sn, Tn)).astype(jnp.float32)

    out = jax.block_until_ready(
        multi_head_token_attention(ini_q, ini_k, mask, params, head_num=HEADS))
    out_res = jax.block_until_ready(
        multi_head_token_attention(ini_q, ini_k, mask, params, head_num=HEADS,
                                   residual=True))

    ref = _reference(ini_q, ini_k, mask, params, HEADS, residual=False)
    ref_res = _reference(ini_q, ini_k, mask, params, HEADS, residual=True)

    assert out.shape == (B, Qn, Sn, H)
    assert out_res.shape == (B, Qn, Sn, H)
    assert jnp.allclose(out, ref, atol=1e-3, rtol=1e-3)
    assert jnp.allclose(out_res, ref_res, atol=1e-3, rtol=1e-3)

    print("KERNEL_OK")
</pallas_src>

<mosaic_0001>
module attributes {stable_mosaic.version = 11 : i64} {
  func.func @_mhta_kernel(%arg0: i32, %arg1: i32, %arg2: memref<1x4x32xf32, #tpu.memory_space<vmem>>, %arg3: memref<1x1x8x32xf32, #tpu.memory_space<vmem>>, %arg4: memref<1x1x1x8xf32, #tpu.memory_space<vmem>>, %arg5: memref<4x32x32xf32, #tpu.memory_space<vmem>>, %arg6: memref<6x32xf32, #tpu.memory_space<vmem>>, %arg7: memref<1x1x4x32xf32, #tpu.memory_space<vmem>>, %arg8: memref<4x32xf32, #tpu.memory_space<vmem>>) attributes {dimension_semantics = [#tpu.dimension_semantics<parallel>, #tpu.dimension_semantics<arbitrary>], iteration_bounds = array<i64: 2, 3>, scalar_prefetch = 0 : i64, scratch_operands = 1 : i64, tpu.core_type = #tpu.core_type<tc>, window_params = [{transform_indices = @transform_0, window_bounds = array<i64: 1, 4, 32>}, {transform_indices = @transform_1, window_bounds = array<i64: 1, 1, 8, 32>}, {transform_indices = @transform_2, window_bounds = array<i64: 1, 1, 1, 8>}, {pipeline_mode = #tpu.pipeline_mode<synchronous>, transform_indices = @transform_3, window_bounds = array<i64: 4, 32, 32>}, {pipeline_mode = #tpu.pipeline_mode<synchronous>, transform_indices = @transform_4, window_bounds = array<i64: 6, 32>}, {transform_indices = @transform_5, window_bounds = array<i64: 1, 1, 4, 32>}]} {
    %c0 = arith.constant 0 : index
    %c0_0 = arith.constant 0 : index
    %0 = vector.load %arg6[%c0, %c0_0] : memref<6x32xf32, #tpu.memory_space<vmem>>, vector<1x32xf32>
    %c1 = arith.constant 1 : index
    %c0_1 = arith.constant 0 : index
    %1 = vector.load %arg6[%c1, %c0_1] : memref<6x32xf32, #tpu.memory_space<vmem>>, vector<1x32xf32>
    %c2 = arith.constant 2 : index
    %c0_2 = arith.constant 0 : index
    %2 = vector.load %arg6[%c2, %c0_2] : memref<6x32xf32, #tpu.memory_space<vmem>>, vector<1x32xf32>
    %c3 = arith.constant 3 : index
    %c0_3 = arith.constant 0 : index
    %3 = vector.load %arg6[%c3, %c0_3] : memref<6x32xf32, #tpu.memory_space<vmem>>, vector<1x32xf32>
    %c4 = arith.constant 4 : index
    %c0_4 = arith.constant 0 : index
    %4 = vector.load %arg6[%c4, %c0_4] : memref<6x32xf32, #tpu.memory_space<vmem>>, vector<1x32xf32>
    %c5 = arith.constant 5 : index
    %c0_5 = arith.constant 0 : index
    %5 = vector.load %arg6[%c5, %c0_5] : memref<6x32xf32, #tpu.memory_space<vmem>>, vector<1x32xf32>
    %c0_i32 = arith.constant 0 : i32
    %6 = arith.cmpi eq, %arg1, %c0_i32 : i32
    %7 = arith.extui %6 : i1 to i32
    %c0_i32_6 = arith.constant 0 : i32
    %8 = arith.cmpi ne, %7, %c0_i32_6 : i32
    scf.if %8 {
      %c0_61 = arith.constant 0 : index
      %c0_62 = arith.constant 0 : index
      %c0_63 = arith.constant 0 : index
      %138 = vector.load %arg2[%c0_61, %c0_62, %c0_63] : memref<1x4x32xf32, #tpu.memory_space<vmem>>, vector<1x4x32xf32>
      %139 = vector.shape_cast %138 : vector<1x4x32xf32> to vector<4x32xf32>
      %c0_64 = arith.constant 0 : index
      %c0_65 = arith.constant 0 : index
      %c0_66 = arith.constant 0 : index
      %140 = vector.load %arg5[%c0_64, %c0_65, %c0_66] : memref<4x32x32xf32, #tpu.memory_space<vmem>>, vector<1x32x32xf32>
      %141 = vector.shape_cast %140 : vector<1x32x32xf32> to vector<32x32xf32>
      %cst_67 = arith.constant dense<0.000000e+00> : vector<4x32xf32>
      %142 = tpu.matmul %139, %141, %cst_67 {dimension_numbers = #tpu.dot_dimension_numbers<[1], [0], [0], [1], [0, 0, 1, 1], [], []>, precision = #tpu.contract_precision<fp32>} : vector<4x32xf32>, vector<32x32xf32>, vector<4x32xf32> -> vector<4x32xf32>
      %143 = vector.broadcast %0 : vector<1x32xf32> to vector<4x32xf32>
      %144 = arith.addf %142, %143 : vector<4x32xf32>
      %c0_68 = arith.constant 0 : index
      %c0_69 = arith.constant 0 : index
      %145 = vector.load %arg8[%c0_68, %c0_69] : memref<4x32xf32, #tpu.memory_space<vmem>>, vector<4x32xf32>
      tpu.vector_store %arg8[%c0_68, %c0_69], %144 {strides = array<i32>} : memref<4x32xf32, #tpu.memory_space<vmem>>, vector<4x32xf32>,
    } else {
    }
    %c0_7 = arith.constant 0 : index
    %c0_8 = arith.constant 0 : index
    %9 = vector.load %arg8[%c0_7, %c0_8] : memref<4x32xf32, #tpu.memory_space<vmem>>, vector<4x32xf32>
    %c0_9 = arith.constant 0 : index
    %c0_10 = arith.constant 0 : index
    %c0_11 = arith.constant 0 : index
    %c0_12 = arith.constant 0 : index
    %10 = vector.load %arg3[%c0_9, %c0_10, %c0_11, %c0_12] : memref<1x1x8x32xf32, #tpu.memory_space<vmem>>, vector<1x1x8x32xf32>
    %11 = vector.shape_cast %10 : vector<1x1x8x32xf32> to vector<8x32xf32>
    %c1_13 = arith.constant 1 : index
    %c0_14 = arith.constant 0 : index
    %c0_15 = arith.constant 0 : index
    %12 = vector.load %arg5[%c1_13, %c0_14, %c0_15] : memref<4x32x32xf32, #tpu.memory_space<vmem>>, vector<1x32x32xf32>
    %13 = vector.shape_cast %12 : vector<1x32x32xf32> to vector<32x32xf32>
    %cst = arith.constant dense<0.000000e+00> : vector<8x32xf32>
    %14 = tpu.matmul %11, %13, %cst {dimension_numbers = #tpu.dot_dimension_numbers<[1], [0], [0], [1], [0, 0, 1, 1], [], []>, precision = #tpu.contract_precision<fp32>} : vector<8x32xf32>, vector<32x32xf32>, vector<8x32xf32> -> vector<8x32xf32>
    %15 = vector.broadcast %1 : vector<1x32xf32> to vector<8x32xf32>
    %16 = arith.addf %14, %15 : vector<8x32xf32>
    %c2_16 = arith.constant 2 : index
    %c0_17 = arith.constant 0 : index
    %c0_18 = arith.constant 0 : index
    %17 = vector.load %arg5[%c2_16, %c0_17, %c0_18] : memref<4x32x32xf32, #tpu.memory_space<vmem>>, vector<1x32x32xf32>
    %18 = vector.shape_cast %17 : vector<1x32x32xf32> to vector<32x32xf32>
    %cst_19 = arith.constant dense<0.000000e+00> : vector<8x32xf32>
    %19 = tpu.matmul %11, %18, %cst_19 {dimension_numbers = #tpu.dot_dimension_numbers<[1], [0], [0], [1], [0, 0, 1, 1], [], []>, precision = #tpu.contract_precision<fp32>} : vector<8x32xf32>, vector<32x32xf32>, vector<8x32xf32> -> vector<8x32xf32>
    %20 = vector.broadcast %2 : vector<1x32xf32> to vector<8x32xf32>
    %21 = arith.addf %19, %20 : vector<8x32xf32>
    %c3_20 = arith.constant 3 : index
    %c0_21 = arith.constant 0 : index
    %c0_22 = arith.constant 0 : index
    %22 = vector.load %arg5[%c3_20, %c0_21, %c0_22] : memref<4x32x32xf32, #tpu.memory_space<vmem>>, vector<1x32x32xf32>
    %23 = vector.shape_cast %22 : vector<1x32x32xf32> to vector<32x32xf32>
    %c0_23 = arith.constant 0 : index
    %c0_24 = arith.constant 0 : index
    %c0_25 = arith.constant 0 : index
    %c0_26 = arith.constant 0 : index
    %24 = vector.load %arg4[%c0_23, %c0_24, %c0_25, %c0_26] : memref<1x1x1x8xf32, #tpu.memory_space<vmem>>, vector<1x1x1x8xf32>
    %25 = vector.shape_cast %24 : vector<1x1x1x8xf32> to vector<1x8xf32>
    %cst_27 = arith.constant -1.000000e+04 : f32
    %26 = vector.broadcast %cst_27 : f32 to vector<1x8xf32>
    %27 = arith.mulf %25, %26 : vector<1x8xf32>
    %28 = vector.extract_strided_slice %9 {offsets = [0, 0], sizes = [4, 8], strides = [1, 1]} : vector<4x32xf32> to vector<4x8xf32>
    %29 = vector.extract_strided_slice %16 {offsets = [0, 0], sizes = [8, 8], strides = [1, 1]} : vector<8x32xf32> to vector<8x8xf32>
    %30 = vector.extract_strided_slice %21 {offsets = [0, 0], sizes = [8, 8], strides = [1, 1]} : vector<8x32xf32> to vector<8x8xf32>
    %cst_28 = arith.constant dense<0.000000e+00> : vector<4x8xf32>
    %31 = tpu.matmul %28, %29, %cst_28 {dimension_numbers = #tpu.dot_dimension_numbers<[1], [1], [0], [0], [0, 0, 1, 0], [], []>, precision = #tpu.contract_precision<fp32>} : vector<4x8xf32>, vector<8x8xf32>, vector<4x8xf32> -> vector<4x8xf32>
    %cst_29 = arith.constant 0.353553385 : f32
    %32 = vector.broadcast %cst_29 : f32 to vector<4x8xf32>
    %33 = arith.mulf %31, %32 : vector<4x8xf32>
    %34 = vector.broadcast %27 : vector<1x8xf32> to vector<4x8xf32>
    %35 = arith.addf %33, %34 : vector<4x8xf32>
    %cst_30 = arith.constant dense<0xFF800000> : vector<4xf32>
    %36 = vector.multi_reduction <maximumf>, %35, %cst_30 [1] : vector<4x8xf32> to vector<4xf32>
    %37 = vector.shape_cast %36 : vector<4xf32> to vector<4x1xf32>
    %38 = vector.broadcast %37 : vector<4x1xf32> to vector<4x8xf32>
    %39 = arith.subf %35, %38 : vector<4x8xf32>
    %40 = math.exp %39 : vector<4x8xf32>
    %cst_31 = arith.constant dense<0.000000e+00> : vector<4xf32>
    %41 = vector.multi_reduction <add>, %40, %cst_31 [1] : vector<4x8xf32> to vector<4xf32>
    %42 = vector.shape_cast %41 : vector<4xf32> to vector<4x1xf32>
    %43 = vector.broadcast %42 : vector<4x1xf32> to vector<4x8xf32>
    %44 = arith.divf %40, %43 : vector<4x8xf32>
    %cst_32 = arith.constant dense<0.000000e+00> : vector<4x8xf32>
    %45 = tpu.matmul %44, %30, %cst_32 {dimension_numbers = #tpu.dot_dimension_numbers<[1], [0], [0], [1], [0, 0, 1, 1], [], []>, precision = #tpu.contract_precision<fp32>} : vector<4x8xf32>, vector<8x8xf32>, vector<4x8xf32> -> vector<4x8xf32>
    %46 = vector.extract_strided_slice %23 {offsets = [0, 0], sizes = [8, 32], strides = [1, 1]} : vector<32x32xf32> to vector<8x32xf32>
    %cst_33 = arith.constant dense<0.000000e+00> : vector<4x32xf32>
    %47 = tpu.matmul %45, %46, %cst_33 {dimension_numbers = #tpu.dot_dimension_numbers<[1], [0], [0], [1], [0, 0, 1, 1], [], []>, precision = #tpu.contract_precision<fp32>} : vector<4x8xf32>, vector<8x32xf32>, vector<4x32xf32> -> vector<4x32xf32>
    %48 = vector.extract_strided_slice %9 {offsets = [0, 8], sizes = [4, 8], strides = [1, 1]} : vector<4x32xf32> to vector<4x8xf32>
    %49 = vector.extract_strided_slice %16 {offsets = [0, 8], sizes = [8, 8], strides = [1, 1]} : vector<8x32xf32> to vector<8x8xf32>
    %50 = vector.extract_strided_slice %21 {offsets = [0, 8], sizes = [8, 8], strides = [1, 1]} : vector<8x32xf32> to vector<8x8xf32>
    %cst_34 = arith.constant dense<0.000000e+00> : vector<4x8xf32>
    %51 = tpu.matmul %48, %49, %cst_34 {dimension_numbers = #tpu.dot_dimension_numbers<[1], [1], [0], [0], [0, 0, 1, 0], [], []>, precision = #tpu.contract_precision<fp32>} : vector<4x8xf32>, vector<8x8xf32>, vector<4x8xf32> -> vector<4x8xf32>
    %cst_35 = arith.constant 0.353553385 : f32
    %52 = vector.broadcast %cst_35 : f32 to vector<4x8xf32>
    %53 = arith.mulf %51, %52 : vector<4x8xf32>
    %54 = vector.broadcast %27 : vector<1x8xf32> to vector<4x8xf32>
    %55 = arith.addf %53, %54 : vector<4x8xf32>
    %cst_36 = arith.constant dense<0xFF800000> : vector<4xf32>
    %56 = vector.multi_reduction <maximumf>, %55, %cst_36 [1] : vector<4x8xf32> to vector<4xf32>
    %57 = vector.shape_cast %56 : vector<4xf32> to vector<4x1xf32>
    %58 = vector.broadcast %57 : vector<4x1xf32> to vector<4x8xf32>
    %59 = arith.subf %55, %58 : vector<4x8xf32>
    %60 = math.exp %59 : vector<4x8xf32>
    %cst_37 = arith.constant dense<0.000000e+00> : vector<4xf32>
    %61 = vector.multi_reduction <add>, %60, %cst_37 [1] : vector<4x8xf32> to vector<4xf32>
    %62 = vector.shape_cast %61 : vector<4xf32> to vector<4x1xf32>
    %63 = vector.broadcast %62 : vector<4x1xf32> to vector<4x8xf32>
    %64 = arith.divf %60, %63 : vector<4x8xf32>
    %cst_38 = arith.constant dense<0.000000e+00> : vector<4x8xf32>
    %65 = tpu.matmul %64, %50, %cst_38 {dimension_numbers = #tpu.dot_dimension_numbers<[1], [0], [0], [1], [0, 0, 1, 1], [], []>, precision = #tpu.contract_precision<fp32>} : vector<4x8xf32>, vector<8x8xf32>, vector<4x8xf32> -> vector<4x8xf32>
    %66 = vector.extract_strided_slice %23 {offsets = [8, 0], sizes = [8, 32], strides = [1, 1]} : vector<32x32xf32> to vector<8x32xf32>
    %cst_39 = arith.constant dense<0.000000e+00> : vector<4x32xf32>
    %67 = tpu.matmul %65, %66, %cst_39 {dimension_numbers = #tpu.dot_dimension_numbers<[1], [0], [0], [1], [0, 0, 1, 1], [], []>, precision = #tpu.contract_precision<fp32>} : vector<4x8xf32>, vector<8x32xf32>, vector<4x32xf32> -> vector<4x32xf32>
    %68 = arith.addf %47, %67 : vector<4x32xf32>
    %69 = vector.extract_strided_slice %9 {offsets = [0, 16], sizes = [4, 8], strides = [1, 1]} : vector<4x32xf32> to vector<4x8xf32>
    %70 = vector.extract_strided_slice %16 {offsets = [0, 16], sizes = [8, 8], strides = [1, 1]} : vector<8x32xf32> to vector<8x8xf32>
    %71 = vector.extract_strided_slice %21 {offsets = [0, 16], sizes = [8, 8], strides = [1, 1]} : vector<8x32xf32> to vector<8x8xf32>
    %cst_40 = arith.constant dense<0.000000e+00> : vector<4x8xf32>
    %72 = tpu.matmul %69, %70, %cst_40 {dimension_numbers = #tpu.dot_dimension_numbers<[1], [1], [0], [0], [0, 0, 1, 0], [], []>, precision = #tpu.contract_precision<fp32>} : vector<4x8xf32>, vector<8x8xf32>, vector<4x8xf32> -> vector<4x8xf32>
    %cst_41 = arith.constant 0.353553385 : f32
    %73 = vector.broadcast %cst_41 : f32 to vector<4x8xf32>
    %74 = arith.mulf %72, %73 : vector<4x8xf32>
    %75 = vector.broadcast %27 : vector<1x8xf32> to vector<4x8xf32>
    %76 = arith.addf %74, %75 : vector<4x8xf32>
    %cst_42 = arith.constant dense<0xFF800000> : vector<4xf32>
    %77 = vector.multi_reduction <maximumf>, %76, %cst_42 [1] : vector<4x8xf32> to vector<4xf32>
    %78 = vector.shape_cast %77 : vector<4xf32> to vector<4x1xf32>
    %79 = vector.broadcast %78 : vector<4x1xf32> to vector<4x8xf32>
    %80 = arith.subf %76, %79 : vector<4x8xf32>
    %81 = math.exp %80 : vector<4x8xf32>
    %cst_43 = arith.constant dense<0.000000e+00> : vector<4xf32>
    %82 = vector.multi_reduction <add>, %81, %cst_43 [1] : vector<4x8xf32> to vector<4xf32>
    %83 = vector.shape_cast %82 : vector<4xf32> to vector<4x1xf32>
    %84 = vector.broadcast %83 : vector<4x1xf32> to vector<4x8xf32>
    %85 = arith.divf %81, %84 : vector<4x8xf32>
    %cst_44 = arith.constant dense<0.000000e+00> : vector<4x8xf32>
    %86 = tpu.matmul %85, %71, %cst_44 {dimension_numbers = #tpu.dot_dimension_numbers<[1], [0], [0], [1], [0, 0, 1, 1], [], []>, precision = #tpu.contract_precision<fp32>} : vector<4x8xf32>, vector<8x8xf32>, vector<4x8xf32> -> vector<4x8xf32>
    %87 = vector.extract_strided_slice %23 {offsets = [16, 0], sizes = [8, 32], strides = [1, 1]} : vector<32x32xf32> to vector<8x32xf32>
    %cst_45 = arith.constant dense<0.000000e+00> : vector<4x32xf32>
    %88 = tpu.matmul %86, %87, %cst_45 {dimension_numbers = #tpu.dot_dimension_numbers<[1], [0], [0], [1], [0, 0, 1, 1], [], []>, precision = #tpu.contract_precision<fp32>} : vector<4x8xf32>, vector<8x32xf32>, vector<4x32xf32> -> vector<4x32xf32>
    %89 = arith.addf %68, %88 : vector<4x32xf32>
    %90 = vector.extract_strided_slice %9 {offsets = [0, 24], sizes = [4, 8], strides = [1, 1]} : vector<4x32xf32> to vector<4x8xf32>
    %91 = vector.extract_strided_slice %16 {offsets = [0, 24], sizes = [8, 8], strides = [1, 1]} : vector<8x32xf32> to vector<8x8xf32>
    %92 = vector.extract_strided_slice %21 {offsets = [0, 24], sizes = [8, 8], strides = [1, 1]} : vector<8x32xf32> to vector<8x8xf32>
    %cst_46 = arith.constant dense<0.000000e+00> : vector<4x8xf32>
    %93 = tpu.matmul %90, %91, %cst_46 {dimension_numbers = #tpu.dot_dimension_numbers<[1], [1], [0], [0], [0, 0, 1, 0], [], []>, precision = #tpu.contract_precision<fp32>} : vector<4x8xf32>, vector<8x8xf32>, vector<4x8xf32> -> vector<4x8xf32>
    %cst_47 = arith.constant 0.353553385 : f32
    %94 = vector.broadcast %cst_47 : f32 to vector<4x8xf32>
    %95 = arith.mulf %93, %94 : vector<4x8xf32>
    %96 = vector.broadcast %27 : vector<1x8xf32> to vector<4x8xf32>
    %97 = arith.addf %95, %96 : vector<4x8xf32>
    %cst_48 = arith.constant dense<0xFF800000> : vector<4xf32>
    %98 = vector.multi_reduction <maximumf>, %97, %cst_48 [1] : vector<4x8xf32> to vector<4xf32>
    %99 = vector.shape_cast %98 : vector<4xf32> to vector<4x1xf32>
    %100 = vector.broadcast %99 : vector<4x1xf32> to vector<4x8xf32>
    %101 = arith.subf %97, %100 : vector<4x8xf32>
    %102 = math.exp %101 : vector<4x8xf32>
    %cst_49 = arith.constant dense<0.000000e+00> : vector<4xf32>
    %103 = vector.multi_reduction <add>, %102, %cst_49 [1] : vector<4x8xf32> to vector<4xf32>
    %104 = vector.shape_cast %103 : vector<4xf32> to vector<4x1xf32>
    %105 = vector.broadcast %104 : vector<4x1xf32> to vector<4x8xf32>
    %106 = arith.divf %102, %105 : vector<4x8xf32>
    %cst_50 = arith.constant dense<0.000000e+00> : vector<4x8xf32>
    %107 = tpu.matmul %106, %92, %cst_50 {dimension_numbers = #tpu.dot_dimension_numbers<[1], [0], [0], [1], [0, 0, 1, 1], [], []>, precision = #tpu.contract_precision<fp32>} : vector<4x8xf32>, vector<8x8xf32>, vector<4x8xf32> -> vector<4x8xf32>
    %108 = vector.extract_strided_slice %23 {offsets = [24, 0], sizes = [8, 32], strides = [1, 1]} : vector<32x32xf32> to vector<8x32xf32>
    %cst_51 = arith.constant dense<0.000000e+00> : vector<4x32xf32>
    %109 = tpu.matmul %107, %108, %cst_51 {dimension_numbers = #tpu.dot_dimension_numbers<[1], [0], [0], [1], [0, 0, 1, 1], [], []>, precision = #tpu.contract_precision<fp32>} : vector<4x8xf32>, vector<8x32xf32>, vector<4x32xf32> -> vector<4x32xf32>
    %110 = arith.addf %89, %109 : vector<4x32xf32>
    %111 = vector.broadcast %3 : vector<1x32xf32> to vector<4x32xf32>
    %112 = arith.addf %110, %111 : vector<4x32xf32>
    %cst_52 = arith.constant dense<0.000000e+00> : vector<4xf32>
    %113 = vector.multi_reduction <add>, %112, %cst_52 [1] : vector<4x32xf32> to vector<4xf32>
    %114 = vector.shape_cast %113 : vector<4xf32> to vector<4x1xf32>
    %cst_53 = arith.constant 3.200000e+01 : f32
    %115 = vector.broadcast %cst_53 : f32 to vector<4x1xf32>
    %116 = arith.divf %114, %115 : vector<4x1xf32>
    %117 = vector.broadcast %116 : vector<4x1xf32> to vector<4x32xf32>
    %118 = arith.subf %112, %117 : vector<4x32xf32>
    %119 = arith.mulf %118, %118 : vector<4x32xf32>
    %cst_54 = arith.constant dense<0.000000e+00> : vector<4xf32>
    %120 = vector.multi_reduction <add>, %119, %cst_54 [1] : vector<4x32xf32> to vector<4xf32>
    %121 = vector.shape_cast %120 : vector<4xf32> to vector<4x1xf32>
    %cst_55 = arith.constant 3.200000e+01 : f32
    %122 = vector.broadcast %cst_55 : f32 to vector<4x1xf32>
    %123 = arith.divf %121, %122 : vector<4x1xf32>
    %124 = vector.broadcast %116 : vector<4x1xf32> to vector<4x32xf32>
    %125 = arith.subf %112, %124 : vector<4x32xf32>
    %cst_56 = arith.constant 9.99999996E-13 : f32
    %126 = vector.broadcast %cst_56 : f32 to vector<4x1xf32>
    %127 = arith.addf %123, %126 : vector<4x1xf32>
    %128 = math.rsqrt %127 : vector<4x1xf32>
    %129 = vector.broadcast %128 : vector<4x1xf32> to vector<4x32xf32>
    %130 = arith.mulf %125, %129 : vector<4x32xf32>
    %131 = vector.broadcast %4 : vector<1x32xf32> to vector<4x32xf32>
    %132 = arith.mulf %130, %131 : vector<4x32xf32>
    %133 = vector.broadcast %5 : vector<1x32xf32> to vector<4x32xf32>
    %134 = arith.addf %132, %133 : vector<4x32xf32>
    %c0_57 = arith.constant 0 : index
    %c0_58 = arith.constant 0 : index
    %c0_59 = arith.constant 0 : index
    %c0_60 = arith.constant 0 : index
    %135 = vector.load %arg7[%c0_57, %c0_58, %c0_59, %c0_60] : memref<1x1x4x32xf32, #tpu.memory_space<vmem>>, vector<1x1x4x32xf32>
    %136 = vector.shape_cast %135 : vector<1x1x4x32xf32> to vector<4x32xf32>
    %137 = vector.shape_cast %134 : vector<4x32xf32> to vector<1x1x4x32xf32>
    tpu.vector_store %arg7[%c0_57, %c0_58, %c0_59, %c0_60], %137 {strides = array<i32>} : memref<1x1x4x32xf32, #tpu.memory_space<vmem>>, vector<1x1x4x32xf32>,
    return
  }
  func.func @transform_0(%arg0: i32, %arg1: i32) -> (i32, i32, i32) {
    %c0_i32 = arith.constant 0 : i32
    %c0_i32_0 = arith.constant 0 : i32
    %c0_i32_1 = arith.constant 0 : i32
    return %arg0, %c0_i32, %c0_i32_0 : i32, i32, i32
  }
  func.func @transform_1(%arg0: i32, %arg1: i32) -> (i32, i32, i32, i32) {
    %c0_i32 = arith.constant 0 : i32
    %c0_i32_0 = arith.constant 0 : i32
    %c0_i32_1 = arith.constant 0 : i32
    return %arg0, %arg1, %c0_i32, %c0_i32_0 : i32, i32, i32, i32
  }
  func.func @transform_2(%arg0: i32, %arg1: i32) -> (i32, i32, i32, i32) {
    %c0_i32 = arith.constant 0 : i32
    %c0_i32_0 = arith.constant 0 : i32
    %c0_i32_1 = arith.constant 0 : i32
    return %arg0, %arg1, %c0_i32, %c0_i32_0 : i32, i32, i32, i32
  }
  func.func @transform_3(%arg0: i32, %arg1: i32) -> (i32, i32, i32) {
    %c0_i32 = arith.constant 0 : i32
    %c0_i32_0 = arith.constant 0 : i32
    %c0_i32_1 = arith.constant 0 : i32
    %c0_i32_2 = arith.constant 0 : i32
    return %c0_i32, %c0_i32_0, %c0_i32_1 : i32, i32, i32
  }
  func.func @transform_4(%arg0: i32, %arg1: i32) -> (i32, i32) {
    %c0_i32 = arith.constant 0 : i32
    %c0_i32_0 = arith.constant 0 : i32
    %c0_i32_1 = arith.constant 0 : i32
    return %c0_i32, %c0_i32_0 : i32, i32
  }
  func.func @transform_5(%arg0: i32, %arg1: i32) -> (i32, i32, i32, i32) {
    %c0_i32 = arith.constant 0 : i32
    %c0_i32_0 = arith.constant 0 : i32
    %c0_i32_1 = arith.constant 0 : i32
    return %arg0, %arg1, %c0_i32, %c0_i32_0 : i32, i32, i32, i32
  }
}

</mosaic_0001>

<bundles_post_ra>
// kernel: tpu_custom_call.1
= control target key start
LH: loop header
LB: loop body
LE: loop exit
PB: predicated region body
PF: predicated region fallthrough
CT: control target
= control target key end

     0   :  { %s4064_s0 = inlined_call_operand.hbm [shape: f32[2,4,32], index: 0, kind: input, shape index: {}]   ;;  %s4065_s1 = inlined_call_operand.hbm [shape: f32[2,3,8,32], index: 1, kind: input, shape index: {}]   ;;  %s4066_s2 = inlined_call_operand.hbm [shape: f32[2,3,1,8], index: 2, kind: input, shape index: {}]   ;;  %s4067_s3 = inlined_call_operand.hbm [shape: f32[4,32,32], index: 3, kind: input, shape index: {}]   ;;  %s4068_s4 = inlined_call_operand.hbm [shape: f32[6,32], index: 4, kind: input, shape index: {}]   ;;  %s4069_s5 = inlined_call_operand.hbm [shape: f32[2,3,4,32], index: 5, kind: output, shape index: {}]  }
   0x1   :  { %4081 = sst [smem:[#allocation26_spill]] %s4065_s1 }
   0x2   :  { %4082 = sst [smem:[#allocation27_spill]] %s4067_s3 }
   0x3   :  { %4083 = sst [smem:[#allocation28_spill]] %s4068_s4 }
   0x4   :  { %4084 = sst [smem:[#allocation29_spill]] %s4069_s5 }
   0x5   :  { %10 = vsyncpa [#allocation4], 0 }
   0x6   :  { %12 = vsyncpa [#allocation4 + $0x1], 0 }
   0x7   :  { %13 = vsyncpa [#allocation7], 0 }
   0x8   :  { %15 = vsyncpa [#allocation7 + $0x1], 0 }
   0x9   :  { %16 = vsyncpa [#allocation10], 0 }
   0xa   :  { %17 = vsyncpa [#allocation5], 0 }
   0xb   :  { %19 = vsyncpa [#allocation5 + $0x1], 0  ;;  %s3598_s18 = smov 0   ;;  %s3600_s19 = smov 0  }
   0xc   :  { %s3602_s20 = smov 0   ;;  %s3604_s21 = smov 0  }
   0xd   :  { %s3606_s22 = smov 0   ;;  %s3608_s23 = smov 0  }
   0xe   :  { %s3610_s24 = smov 0   ;;  %s3612_s25 = smov 0  }
   0xf   :  { %s3614_s26 = smov 0   ;;  %s3616_s27 = smov 0  }
  0x10   :  { %s3618_s28 = smov 0  }
  0x11 LB: > { %4085 = sst [smem:[#allocation17_spill]] %s3518_s18  ;;  %s3654_s29 = sadd.s32 4294967295, %s3558_s28   ;;  %s3558_s28 = sphi %s3618_s28, %s25_s28   ;;  %s3554_s27 = sphi %s3616_s27, %s4118_s27   ;;  %s3550_s26 = sphi %s3614_s26, %s4117_s26   ;;  %s3546_s25 = sphi %s3612_s25, %s4116_s25   ;;  %s3542_s24 = sphi %s3610_s24, %s4115_s24   ;;  %s3538_s23 = sphi %s3608_s23, %s4124_s23   ;;  %s3534_s22 = sphi %s3606_s22, %s4123_s22   ;;  %s3530_s21 = sphi %s3604_s21, %s4122_s21   ;;  %s3526_s20 = sphi %s3602_s20, %s4121_s20   ;;  %s3522_s19 = sphi %s3600_s19, %s4120_s19   ;;  %s3518_s18 = sphi %s3598_s18, %s4119_s18  }
  0x12   : > { %4086 = sst [smem:[#allocation18_spill]] %s3546_s25  ;;  %p3097_p0 = scmp.ge.s32.totalorder %s3558_s28, 1 }
  0x13   : > { %4087 = sst [smem:[#allocation19_spill]] %s3550_s26  ;;  %p4070_p1 = scmp.eq.s32.totalorder %s3654_s29, 0 }
  0x14   : > { %4088 = sst [smem:[#allocation20_spill]] %s3554_s27  ;;  %p194_p2 = scmp.lt.s32.totalorder %s3558_s28, 7 }
  0x15   : > { %s4089_s3 = sld [smem:[#allocation27_spill]]  ;;  %s3560_s9 = smov [#allocation9]  }
  0x16   : > { %p3662_p3 = pnand %p3097_p0, %p194_p2  ;;  %s207_s10 = sshll.u32 %s3560_s9, 4  ;;  %s208_s10 = int_to_ptr.vmem [resolvable:$true] %s207_s10 }
  0x17   : > { %s3561_s12 = smov 128   ;;  %s3562_s13 = smov 8  }
  0x18   : > { %p3135_p4 = pneg %p3662_p3  ;;  %s3096_s14 = sadd.s32 4294967294, %s3558_s28  }
  0x19   : > { %s34_s15 = sadd.s32 1, %s3550_s26  ;;  %s37_s16 = sadd.s32 1, %s3554_s27 }
  0x1a   : > { %p3670_p5 = pnand %p3135_p4, %p4070_p1  ;;  %p35_p6 = scmp.ge.s32.totalorder %s34_s15, 3 }
  0x1b   : > { %s205_s7 = sshll.u32 %s4089_s3, 4  ;;  %p52_p7 = scmp.eq.s32.totalorder %s3558_s28, 0  ;;  %s206_s7 = int_to_ptr.hbm [resolvable:$true] %s205_s7 }
  0x1c   : > { %3138 = dma.hbm_to_vmem [thread:$0]  (!%p3670_p5), %s206_s7, 2048, %s208_s10, [#allocation10], %s3561_s12, %s3561_s12, %s3562_s13  }
  0x1d   : > { %s72_s17 = sadd.s32 1, %s3526_s20  ;;  %p79_p8 = scmp.ne.s32.totalorder %s3526_s20, %s3522_s19 }
  0x1e   : > { %s4126_s15 = smov (%p35_p6, %s34_s15), 0  ;;  %s4128_s16 = smov (!%p35_p6, %s37_s16), %s3554_s27 }
  0x1f   : > { %4092 = sst [smem:[#allocation21_spill]] %s4126_s15  ;;  %s68_s30 = ssub.s32 %s3550_s26, %s4126_s15 }
  0x20   : > { %p3690_p9 = por %p79_p8, %p52_p7  ;;  %p39_p10 = scmp.ge.s32.totalorder %s4128_s16, 2 }
  0x21   : > { %p85_p11 = scmp.ne.s32.totalorder %s3522_s19, %s3518_s18  ;;  %p181_p12 = scmp.eq.s32.totalorder %s3654_s29, 5 }
  0x22   : > { %p187_p13 = scmp.eq.s32.totalorder %s3096_s14, 5  ;;  %s4130_s16 = smov (%p39_p10, %s4128_s16), 0 }
  0x23   : > { %4094 = sst [smem:[#allocation22_spill]] %s4130_s16  ;;  %p3701_p0 = por %p85_p11, %p4070_p1 }
  0x24   : > { %p3705_p2 = por %p181_p12, %p79_p8  ;;  %s3711_s10 = ssub.s32 %s3554_s27, %s4130_s16 }
  0x25   : > { %p3713_p4 = por %p187_p13, %p85_p11  ;;  %p42_p6 = scmp.eq.s32.totalorder %s3711_s10, 0 }
  0x26   : > { %s4096_s9 = scalar_select %p3705_p2, 1, 0 }
  0x27   : > { %s4098_s12 = scalar_select %p3713_p4, 1, 0 }
  0x28   : > { %4097 = sst [smem:[#allocation23_spill]] %s4096_s9  ;;  %s69_s13 = sor.u32 %s68_s30, %s3711_s10 }
  0x29   : > { %4099 = sst [smem:[#allocation24_spill]] %s4098_s12  ;;  %p70_p10 = scmp.eq.s32.totalorder %s69_s13, 0 }
  0x2a   : > { %p3158_p1 = scmp.lt.s32.totalorder %s3558_s28, 6  ;;  %s252_s14 = sand.u32 1, %s3558_s28  }
  0x2b   : > { %s4077_s3 = sand.u32 1, %s3526_s20   ;;  %s3116_s5 = smul.u32 3, %s3554_s27 }
  0x2c   : > { %s3723_s15 = scalar_select %p70_p10, %s3526_s20, %s72_s17  }
  0x2d   : > { %s3103_s18 = sshll.u32 %s4077_s3, 3  ;;  %p3732_p8 = pnand %p3158_p1, %p3690_p9 }
  0x2e   : > { %4100 = sst [smem:[#allocation25_spill]] %s3723_s15  ;;  %s256_s9 = scalar_lea.vmem [#allocation6], %s3103_s18 }
  0x2f   : > { %s266_s16 = sshll.u32 %s256_s9, 4  ;;  %s3737_s30 = sadd.s32 %s3550_s26, %s3116_s5  ;;  %s267_s16 = int_to_ptr.vmem [resolvable:$true] %s266_s16 }
  0x30   : > { %s3104_s18 = sshll.u32 %s3737_s30, 3  ;;  %s4102_s1 = sld [smem:[#allocation26_spill]] }
  0x31   : > { %s4103_s4 = sld [smem:[#allocation28_spill]]  ;;  %s3746_s26 = scalar_lea.sflag [#allocation7], %s252_s14 }
  0x32   : > { %s3563_s12 = smov [#allocation11]   ;;  %p51_p9 = scmp.ne.s32.totalorder %s3538_s23, %s3534_s22 }
  0x33   : > { %s222_s17 = sshll.u32 %s3563_s12, 4  ;;  %p57_p12 = scmp.ne.s32.totalorder %s3534_s22, %s3530_s21  ;;  %s223_s17 = int_to_ptr.vmem [resolvable:$true] %s222_s17 }
  0x34   : > { %p53_p11 = por %p52_p7, %p51_p9  ;;  %s233_s14 = sand.u32 1, %s3538_s23  }
  0x35   : > { %s3102_s9 = sshll.u32 %s3554_s27, 2  ;;  %p4104_p13 = scmp.eq.s32.totalorder %s3654_s29, 0 }
  0x36   : > { %s262_s6 = scalar_lea.hbm %s4102_s1, %s3104_s18  ;;  %s44_s18 = sadd.s32 1, %s3538_s23 }
  0x37   : > { %s220_s15 = sshll.u32 %s4103_s4, 4  ;;  %s264_s5 = sshll.u32 %s262_s6, 4  ;;  %s221_s15 = int_to_ptr.hbm [resolvable:$true] %s220_s15  ;;  %s265_s5 = int_to_ptr.hbm [resolvable:$true] %s264_s5 }
  0x38   : > { %3148 = dma.hbm_to_vmem [thread:$0]  (!%p3732_p8), %s265_s5, 128, %s267_s16, %s3746_s26  }
  0x39   : > { %3141 = dma.hbm_to_vmem [thread:$0]  (!%p3670_p5), %s221_s15, 128, %s223_s17, [#allocation10]  }
  0x3a   : > { %s3759_s3 = scalar_select %p42_p6, %s3538_s23, %s44_s18  }
  0x3b   : > { %p3769_p10 = por %p4104_p13, %p57_p12  ;;  %s3101_s11 = sshll.u32 %s233_s14, 2 }
  0x3c   : > { %s241_s10 = scalar_lea.hbm %s4064_s0, %s3102_s9  ;;  %s237_s13 = scalar_lea.vmem [#allocation3], %s3101_s11 }
  0x3d   : > { %s243_s6 = sshll.u32 %s241_s10, 4  ;;  %s245_s5 = sshll.u32 %s237_s13, 4  ;;  %s244_s6 = int_to_ptr.hbm [resolvable:$true] %s243_s6  ;;  %s246_s5 = int_to_ptr.vmem [resolvable:$true] %s245_s5 }
  0x3e   : > { %p3143_p5 = pnand %p3158_p1, %p53_p11  ;;  %s281_s18 = scalar_lea.hbm %s4066_s2, %s3737_s30 }
  0x3f   : > { %s283_s1 = sshll.u32 %s281_s18, 4  ;;  %s234_s4 = scalar_lea.sflag [#allocation4], %s233_s14  ;;  %s284_s1 = int_to_ptr.hbm [resolvable:$true] %s283_s1 }
  0x40   : > { %3145 = dma.hbm_to_vmem [thread:$0]  (!%p3143_p5), %s244_s6, 64, %s246_s5, %s234_s4  }
  0x41   : > { %s4106_s27 = sand.u32 1, %s3526_s20   ;;  %294 = sbr.rel (%p3662_p3) target bundleno = 3009 (0xbc1), region = 40 }
  0x42   : > { %s276_s15 = scalar_lea.vmem [#allocation8], %s4106_s27  ;;  %s296_s9 = sand.u32 (!%p3662_p3), 1, %s3534_s22  }
  0x43   : > { %s285_s12 = sshll.u32 %s276_s15, 4  ;;  %s3790_s11 = sshll.u32 (!%p3662_p3), %s296_s9, 2  ;;  %s286_s12 = int_to_ptr.vmem [resolvable:$true] %s285_s12 }
  0x44   : > { %3151 = dma.hbm_to_vmem [thread:$0]  (!%p3732_p8), %s284_s1, 16, %s286_s12, %s3746_s26  }
  0x45   : > { %s297_s30 = scalar_lea.sflag (!%p3662_p3), [#allocation4], %s296_s9  ;;  %s300_s10 = scalar_lea.vmem (!%p3662_p3), [#allocation3], %s3790_s11 }
  0x46   : > { %3501 = dma.done.wait (%p3769_p10), %s297_s30, 64  }
  0x47   : > { %3503 = vsyncadd (%p3769_p10), %s297_s30, 4294967232  ;;  %s306_s1 = sand.u32 1, %s3654_s29   ;;  %s3799_s4 = sand.u32 1, %s3522_s19  }
  0x48   : > { %s3107_s25 = sshll.u32 %s3799_s4, 3  ;;  %s307_s26 = scalar_lea.sflag [#allocation7], %s306_s1 }
  0x49   : > { %s3802_s27 = scalar_lea.vmem [#allocation6], %s3107_s25 }
  0x4a   : > { %3505 = dma.done.wait (%p3701_p0), %s307_s26, 144  }
  0x4b   : > { %3507 = vsyncadd (%p3701_p0), %s307_s26, 4294967152  ;;  %s319_s8 = scalar_lea.vmem [#allocation8], %s3799_s4  ;;  %p4107_p1 = scmp.eq.s32.totalorder %s3654_s29, 0 }
  0x4d   : > { %3509 = dma.done.wait (%p4107_p1), [#allocation10], 2176   ;;  %p4108_p3 = pmov %p4107_p1 }
  0x4e   : > { %s3110_s14 = sshll.u32 %s3799_s4, 2  ;;  %v3814_v0 = vld [vmem:[#allocation11] sm:$0x1]  ;;  %v3816_v1 = vld [vmem:[#allocation11 + $0x1] sm:$0x1]  ;;  %p3111_p7 = scmp.ne.s32.totalorder %s3542_s24, 0 }
  0x4f   : > { %3511 = vsyncadd (%p4108_p3), [#allocation10], 4294965120  ;;  %v3818_v2 = vld [vmem:[#allocation11 + $0x2] sm:$0x1]  ;;  %v3820_v3 = vld [vmem:[#allocation11 + $0x3] sm:$0x1] }
  0x50   : > { %v3822_v4 = vld [vmem:[#allocation11 + $0x4] sm:$0x1]  ;;  %v3824_v5 = vld [vmem:[#allocation11 + $0x5] sm:$0x1]  ;;  %s3826_s7 = scalar_lea.vmem [#allocation12], %s3110_s14  ;;  %375 = sbr.rel (%p3111_p7) target bundleno = 240 (0xf0), region = 64 }
  0x55   : > { %v380_v6 = vld [vmem:[#allocation9 + $0x18] sm:$0xff]  ;;  %v379_v7 = vld [vmem:[#allocation9 + $0x10] sm:$0xff]  ;;  %v378_v8 = vld [vmem:[#allocation9 + $0x8] sm:$0xff]  ;;  %vm382_vm0 = vcmask 261120   ;;  %v381_v37 = vperm.slane %v3814_v0, 0  ;;  %vm571_vm1 = vcmask 257024  }
  0x56   : > { %v398_v9 = vand.u32 4294901760, %v380_v6  ;;  %v400_v10 = vand.u32 4294901760, %v379_v7  ;;  %v402_v11 = vand.u32 4294901760, %v378_v8  ;;  %v377_v12 = vld [vmem:[#allocation9] sm:$0xff] }
  0x57   : > { %v376_v13 = vld [vmem:[%s300_s10] sm:$0xf]  ;;  %v404_v14 = vand.u32 4294901760, %v377_v12 }
  0x58   : > { %v384_v15 = vsel %vm382_vm0, %v376_v13, 0  ;;  %v428_v16 = vsub.f32 %v380_v6, %v398_v9  ;;  %399 = vmatpush.msra.mxu0 %v398_v9  ;;  %v434_v17 = vsub.f32 %v379_v7, %v400_v10  ;;  %499 = vmatpush.msra.mxu3 %v398_v9  ;;  %v440_v18 = vsub.f32 %v378_v8, %v402_v11 }
  0x59   : > { %v406_v19 = vand.u32 4294901760, %v384_v15  ;;  %v446_v20 = vsub.f32 %v377_v12, %v404_v14 }
  0x5a   : > { %470 = vmatpush.msra.mxu2 %v428_v16  ;;  %401 = vmatpush.msra.mxu0 %v400_v10  ;;  %v429_v21 = vand.u32 4294901760, %v428_v16  ;;  %v435_v22 = vand.u32 4294901760, %v434_v17  ;;  %v441_v24 = vand.u32 4294901760, %v440_v18 }
  0x5b   : > { %v407_v23 = vsub.f32 %v384_v15, %v406_v19  ;;  %501 = vmatpush.msra.mxu3 %v400_v10  ;;  %v447_v25 = vand.u32 4294901760, %v446_v20 }
  0x5c   : > { %473 = vmatpush.msra.mxu2 %v434_v17  ;;  %v430_v26 = vsub.f32 %v428_v16, %v429_v21  ;;  %403 = vmatpush.msra.mxu0 %v402_v11  ;;  %v436_v27 = vsub.f32 %v434_v17, %v435_v22  ;;  %v442_v28 = vsub.f32 %v440_v18, %v441_v24 }
  0x5d   : > { %v408_v29 = vand.u32 4294901760, %v407_v23  ;;  %503 = vmatpush.msra.mxu3 %v402_v11  ;;  %v448_v33 = vsub.f32 %v446_v20, %v447_v25 }
  0x5e   : > { %v431_v30 = vand.u32 4294901760, %v430_v26  ;;  %476 = vmatpush.msra.mxu2 %v440_v18  ;;  %v437_v31 = vand.u32 4294901760, %v436_v27  ;;  %405 = vmatpush.msra.mxu0 %v404_v14  ;;  %v443_v34 = vand.u32 4294901760, %v442_v28 }
  0x5f   : > { %v409_v32 = vsub.f32 %v407_v23, %v408_v29  ;;  %505 = vmatpush.msra.mxu3 %v404_v14  ;;  %v449_v36 = vand.u32 4294901760, %v448_v33 }
  0x60   : > { %528 = vmatpush.msrb.mxu0 %v429_v21  ;;  %432 = vmatpush.msra.mxu1 %v431_v30 }
  0x61   : > { %479 = vmatpush.msra.mxu2 %v446_v20  ;;  %v410_v35 = vand.u32 4294901760, %v409_v32  ;;  %509 = vmatmul.f32.vlgmr.msra.gmra.mxu3 %v408_v29 }
  0x62   : > { %482 = vmatmul.f32.vlgmr.msra.gmra.mxu2 %v407_v23  ;;  %438 = vmatpush.msra.mxu1 %v437_v31 }
  0x63   : > { %411 = vmatmul.f32.vlgmr.msra.gmra.mxu0 %v410_v35 }
  0x64   : > { %532 = vmatpush.msrb.mxu0 %v435_v22  ;;  %444 = vmatpush.msra.mxu1 %v443_v34 }
  0x66   : > { %536 = vmatpush.msrb.mxu0 %v441_v24  ;;  %450 = vmatpush.msra.mxu1 %v449_v36 }
  0x67   : > { %452 = vmatmul.f32.vlgmr.msra.gmra.mxu1 %v406_v19 }
  0x68   : > { %540 = vmatpush.msrb.mxu0 %v447_v25  ;;  %559 = vmatpush.msrb.mxu1 %v398_v9 }
  0x6a   : > { %561 = vmatpush.msrb.mxu1 %v400_v10 }
  0x6b   : > { %542 = vmatmul.f32.vlgmr.msrb.gmra.mxu0 %v406_v19 }
  0x6c   : > { %563 = vmatpush.msrb.mxu1 %v402_v11 }
  0x6e   : > { %565 = vmatpush.msrb.mxu1 %v404_v14 }
  0x6f   : > { %567 = vmatmul.f32.vlgmr.msrb.gmra.mxu1 %v406_v19 }
  0xe0   : > { %v412_v38 = vpop.f32.mrf.mxu0 }
  0xe1   : > { %v413_v39 = vadd.f32 %v412_v38, %v381_v37 }
  0xe4   : > { %v453_v40 = vpop.f32.mrf.mxu1  ;;  %v510_v43 = vpop.f32.mrf.mxu3 }
  0xe5   : > { %v483_v41 = vpop.f32.mrf.mxu2  ;;  %v454_v42 = vadd.f32 %v453_v40, %v413_v39 }
  0xe7   : > { %v484_v44 = vadd.f32 %v483_v41, %v454_v42 }
  0xe8   : > { %v543_v45 = vpop.f32.mrf.mxu0 }
  0xe9   : > { %v511_v46 = vadd.f32 %v510_v43, %v484_v44 }
  0xeb   : > { %v544_v47 = vadd.f32 %v543_v45, %v511_v46 }
  0xec   : > { %v568_v48 = vpop.f32.mrf.mxu1 }
  0xed   : > { %v569_v49 = vadd.f32 %v568_v48, %v544_v47 }
  0xef   : > { %572 = vst.msk [vmem:[#allocation2] sm:$0xf] %vm571_vm1, %v569_v49 }
  0xf0 PF: > { %v579_v50 = vld [vmem:[#allocation9 + $0x38] sm:$0xff]  ;;  %v578_v51 = vld [vmem:[#allocation9 + $0x30] sm:$0xff]  ;;  %v577_v52 = vld [vmem:[#allocation9 + $0x28] sm:$0xff]  ;;  %vm581_vm2 = vcmask 261120   ;;  %vm968_vm3 = vcmask 64512   ;;  %v580_v47 = vperm.slane %v3816_v1, 0 }
  0xf1   : > { %v3832_v53 = vand.u32 4294901760, %v579_v50  ;;  %v3834_v54 = vand.u32 4294901760, %v578_v51  ;;  %v3836_v55 = vand.u32 4294901760, %v577_v52  ;;  %v576_v56 = vld [vmem:[#allocation9 + $0x20] sm:$0xff]  ;;  %v574_v57 = vld [vmem:[%s3802_s27] sm:$0xff]  ;;  %s3564_s29 = smov 120  }
  0xf2   : > { %v774_v58 = vld [vmem:[#allocation9 + $0x58] sm:$0xff]  ;;  %v3839_v59 = vand.u32 4294901760, %v576_v56  ;;  %v583_v60 = vsel %vm581_vm2, %v574_v57, 0  ;;  %v773_v62 = vld [vmem:[#allocation9 + $0x50] sm:$0xff]  ;;  %v772_v63 = vld [vmem:[#allocation9 + $0x48] sm:$0xff]  ;;  %s3565_s16 = smov 112  }
  0xf3   : > { %v3841_v61 = vand.u32 4294901760, %v774_v58  ;;  %v627_v0 = vsub.f32 %v579_v50, %v3832_v53  ;;  %598 = vmatpush.msra.mxu0 %v3832_v53  ;;  %v633_v6 = vsub.f32 %v578_v51, %v3834_v54  ;;  %698 = vmatpush.msra.mxu3 %v3832_v53  ;;  %v639_v7 = vsub.f32 %v577_v52, %v3836_v55  ;;  %v771_v9 = vld [vmem:[#allocation9 + $0x40] sm:$0xff]  ;;  %s3566_s6 = smov 104   ;;  %s4109_s13 = sld [smem:[#allocation18_spill]] }
  0xf4   : > { %v3848_v8 = vand.u32 4294901760, %v583_v60  ;;  %v645_v10 = vsub.f32 %v576_v56, %v3839_v59  ;;  %v3851_v11 = vand.u32 4294901760, %v773_v62  ;;  %v3856_v13 = vand.u32 4294901760, %v772_v63  ;;  %s4110_s12 = sld [smem:[#allocation29_spill]]  ;;  %s2933_s10 = scalar_lea.sflag [#allocation5], %s3799_s4 }
  0xf5   : > { %v3854_v12 = vsub.f32 %v774_v58, %v3841_v61  ;;  %669 = vmatpush.msra.mxu2 %v627_v0  ;;  %600 = vmatpush.msra.mxu0 %v3834_v54  ;;  %v628_v14 = vand.u32 4294901760, %v627_v0  ;;  %v634_v15 = vand.u32 4294901760, %v633_v6  ;;  %v640_v17 = vand.u32 4294901760, %v639_v7 }
  0xf6   : > { %v3860_v16 = vsub.f32 %v583_v60, %v3848_v8  ;;  %700 = vmatpush.msra.mxu3 %v3834_v54  ;;  %v646_v18 = vand.u32 4294901760, %v645_v10  ;;  %v3865_v20 = vsub.f32 %v773_v62, %v3851_v11  ;;  %v3867_v21 = vand.u32 4294901760, %v771_v9  ;;  %v3911_v46 = vld [vmem:[#allocation2] sm:$0xf] }
  0xf7   : > { %v819_v19 = vand.u32 4294901760, %v3854_v12  ;;  %672 = vmatpush.msra.mxu2 %v633_v6  ;;  %v629_v22 = vsub.f32 %v627_v0, %v628_v14  ;;  %602 = vmatpush.msra.mxu0 %v3836_v55  ;;  %v635_v23 = vsub.f32 %v633_v6, %v634_v15  ;;  %v641_v24 = vsub.f32 %v639_v7, %v640_v17 }
  0xf8   : > { %v3871_v25 = vand.u32 4294901760, %v3860_v16  ;;  %702 = vmatpush.msra.mxu3 %v3836_v55  ;;  %v825_v27 = vand.u32 4294901760, %v3865_v20  ;;  %v830_v28 = vsub.f32 %v772_v63, %v3856_v13  ;;  %v647_v32 = vsub.f32 %v645_v10, %v646_v18 }
  0xf9   : > { %v820_v26 = vsub.f32 %v3854_v12, %v819_v19  ;;  %v630_v29 = vand.u32 4294901760, %v629_v22  ;;  %675 = vmatpush.msra.mxu2 %v639_v7  ;;  %v636_v30 = vand.u32 4294901760, %v635_v23  ;;  %604 = vmatpush.msra.mxu0 %v3839_v59  ;;  %v642_v35 = vand.u32 4294901760, %v641_v24  ;;  %s3118_s5 = smul.u32 3, %s4109_s13 }
  0xfa   : > { %v608_v31 = vsub.f32 %v3860_v16, %v3871_v25  ;;  %704 = vmatpush.msra.mxu3 %v3839_v59  ;;  %v826_v33 = vsub.f32 %v3865_v20, %v825_v27  ;;  %v831_v34 = vand.u32 4294901760, %v830_v28  ;;  %v836_v38 = vsub.f32 %v771_v9, %v3867_v21 }
  0xfb   : > { %727 = vmatpush.msrb.mxu0 %v628_v14  ;;  %631 = vmatpush.msra.mxu1 %v630_v29  ;;  %v821_v37 = vand.u32 4294901760, %v820_v26  ;;  %v648_v40 = vand.u32 4294901760, %v647_v32  ;;  %v970_v48 = vsel %vm968_vm3, %v3911_v46, 0  ;;  %v775_v63 = vperm.slane %v3818_v2, 0  ;;  %s2943_s21 = sadd.s32 %s3542_s24, %s3118_s5  ;;  %s2947_s24 = sshll.u32 %s3826_s7, 4  ;;  %s2948_s24 = int_to_ptr.vmem [resolvable:$true] %s2947_s24 }
  0xfc   : > { %678 = vmatpush.msra.mxu2 %v645_v10  ;;  %v609_v36 = vand.u32 4294901760, %v608_v31  ;;  %708 = vmatmul.f32.vlgmr.msra.gmra.mxu3 %v3871_v25  ;;  %v832_v39 = vsub.f32 %v830_v28, %v831_v34  ;;  %v827_v41 = vand.u32 4294901760, %v826_v33  ;;  %v837_v42 = vand.u32 4294901760, %v836_v38  ;;  %s3113_s17 = sshll.u32 %s2943_s21, 2 }
  0xfd   : > { %681 = vmatmul.f32.vlgmr.msra.gmra.mxu2 %v3860_v16  ;;  %637 = vmatpush.msra.mxu1 %v636_v30  ;;  %v992_v51 = vand.u32 4294901760, %v970_v48  ;;  %vm1126_vm4 = vcmask 60416   ;;  %s2945_s9 = scalar_lea.hbm %s4110_s12, %s3113_s17 }
  0xfe   : > { %610 = vmatmul.f32.vlgmr.msra.gmra.mxu0 %v609_v36  ;;  %789 = vmatpush.msrb.mxu2 %v3841_v61  ;;  %v838_v43 = vsub.f32 %v836_v38, %v837_v42  ;;  %v833_v44 = vand.u32 4294901760, %v832_v39  ;;  %s2949_s30 = sshll.u32 %s2945_s9, 4  ;;  %s2950_s30 = int_to_ptr.hbm [resolvable:$true] %s2949_s30 }
  0xff   : > { %731 = vmatpush.msrb.mxu0 %v634_v15  ;;  %643 = vmatpush.msra.mxu1 %v642_v35  ;;  %s3442_s1 = sshra.s32 %s2950_s30, 4  ;;  %s3443_s1 = int_to_ptr.hbm [resolvable:$true] %s3442_s1 }
 0x100   : > { %822 = vmatpush.msrb.mxu3 %v821_v37  ;;  %791 = vmatpush.msrb.mxu2 %v3851_v11  ;;  %v839_v45 = vand.u32 4294901760, %v838_v43  ;;  %s3444_s25 = scalar_lea.hbm %s3443_s1, 4  ;;  %p3449_p9 = scmp.lt.s32.totalorder %s3443_s1, %s4110_s12 }
 0x101   : > { %735 = vmatpush.msrb.mxu0 %v640_v17  ;;  %649 = vmatpush.msra.mxu1 %v648_v40  ;;  %p3445_p0 = scmp.ne.s32.totalorder %s3443_s1, %s3444_s25 }
 0x102   : > { %828 = vmatpush.msrb.mxu3 %v827_v41  ;;  %651 = vmatmul.f32.vlgmr.msra.gmra.mxu1 %v3848_v8  ;;  %v966_v41 = vld [vmem:[%s319_s8] sm:$0x1]  ;;  %s3448_s8 = scalar_lea.hbm %s4110_s12, 24 }
 0x103   : > { %739 = vmatpush.msrb.mxu0 %v646_v18  ;;  %758 = vmatpush.msrb.mxu1 %v3832_v53  ;;  %p3446_p6 = pnand %p3445_p0, %p3705_p2  ;;  %p3450_p11 = scmp.lt.s32.totalorder %s3448_s8, %s3444_s25 }
 0x104   : > { %793 = vmatpush.msrb.mxu2 %v3856_v13  ;;  %834 = vmatpush.msrb.mxu3 %v833_v44 }
 0x105   : > { %860 = vmatpush.msra.mxu0 %v3854_v12  ;;  %760 = vmatpush.msrb.mxu1 %v3834_v54  ;;  %p3447_p8 = pneg %p3446_p6  ;;  %p3451_p12 = por %p3450_p11, %p3449_p9 }
 0x106   : > { %741 = vmatmul.f32.vlgmr.msrb.gmra.mxu0 %v3848_v8  ;;  %795 = vmatpush.msrb.mxu2 %v3867_v21 }
 0x107   : > { %840 = vmatpush.msrb.mxu3 %v839_v45  ;;  %762 = vmatpush.msrb.mxu1 %v3836_v55  ;;  %v993_v55 = vsub.f32 %v970_v48, %v992_v51  ;;  %v967_v45 = vmul.f32 -10000.0, %v966_v41  ;;  %p3452_p13 = pnand %p3451_p12, %p3447_p8 }
 0x108   : > { %801 = vmatmul.f32.vlgmr.msrb.gmra.mxu2 %v609_v36  ;;  %842 = vmatmul.f32.vlgmr.msrb.gmra.mxu3 %v3848_v8 }
 0x109   : > { %918 = vmatpush.msra.mxu2 %v819_v19  ;;  %764 = vmatpush.msrb.mxu1 %v3839_v59  ;;  %v994_v60 = vand.u32 4294901760, %v993_v55 }
 0x10a   : > { %949 = vmatpush.msra.mxu3 %v3841_v61  ;;  %766 = vmatmul.f32.vlgmr.msrb.gmra.mxu1 %v3848_v8 }
 0x10b   : > { %922 = vmatpush.msra.mxu2 %v825_v27  ;;  %863 = vmatpush.msra.mxu0 %v3865_v20  ;;  %v995_v0 = vsub.f32 %v993_v55, %v994_v60 }
 0x10c   : > { %889 = vmatpush.msra.mxu1 %v3841_v61  ;;  %951 = vmatpush.msra.mxu3 %v3851_v11 }
 0x10d   : > { %926 = vmatpush.msra.mxu2 %v831_v34  ;;  %866 = vmatpush.msra.mxu0 %v830_v28 }
 0x10e   : > { %891 = vmatpush.msra.mxu1 %v3851_v11  ;;  %953 = vmatpush.msra.mxu3 %v3856_v13  ;;  %v996_v11 = vand.u32 4294901760, %v995_v0 }
 0x10f   : > { %930 = vmatpush.msra.mxu2 %v837_v42  ;;  %869 = vmatpush.msra.mxu0 %v836_v38 }
 0x110   : > { %932 = vmatmul.f32.vlgmr.msra.gmra.mxu2 %v3848_v8  ;;  %893 = vmatpush.msra.mxu1 %v3856_v13 }
 0x111   : > { %955 = vmatpush.msra.mxu3 %v3867_v21  ;;  %872 = vmatmul.f32.vlgmr.msra.gmra.mxu0 %v3860_v16 }
 0x112   : > { %957 = vmatmul.f32.vlgmr.msra.gmra.mxu3 %v3848_v8  ;;  %895 = vmatpush.msra.mxu1 %v3867_v21 }
 0x113   : > { %899 = vmatmul.f32.vlgmr.msra.gmra.mxu1 %v3871_v25 }
 0x17b   : > { %v611_v49 = vpop.f32.mrf.mxu0 }
 0x17c   : > { %v612_v50 = vadd.f32 %v611_v49, %v580_v47 }
 0x17f   : > { %v652_v52 = vpop.f32.mrf.mxu1  ;;  %v709_v56 = vpop.f32.mrf.mxu3 }
 0x180   : > { %v682_v53 = vpop.f32.mrf.mxu2  ;;  %v653_v54 = vadd.f32 %v652_v52, %v612_v50  ;;  %v3944_v50 = vperm.slane %v967_v45, 0 }
 0x182   : > { %v683_v57 = vadd.f32 %v682_v53, %v653_v54 }
 0x183   : > { %v742_v58 = vpop.f32.mrf.mxu0 }
 0x184   : > { %v710_v59 = vadd.f32 %v709_v56, %v683_v57 }
 0x186   : > { %v743_v61 = vadd.f32 %v742_v58, %v710_v59 }
 0x187   : > { %v767_v62 = vpop.f32.mrf.mxu1 }
 0x188   : > { %v3917_v1 = vadd.f32 %v767_v62, %v743_v61 }
 0x18a   : > { %1302 = vrot.lane.b32.xlu1 %v3917_v1, %s3564_s29  ;;  %v973_v6 = vsel %vm968_vm3, %v3917_v1, 0 }
 0x18b   : > { %v802_v7 = vpop.f32.mrf.mxu2  ;;  %v990_v8 = vand.u32 4294901760, %v973_v6  ;;  %v843_v10 = vpop.f32.mrf.mxu3 }
 0x18c   : > { %v803_v9 = vadd.f32 %v802_v7, %v775_v63 }
 0x18d   : > { %991 = vmatpush.xpose.msrb.mxu0 %v990_v8  ;;  %1067 = vmatpush.xpose.msrb.mxu3 %v990_v8  ;;  %v1017_v12 = vsub.f32 %v973_v6, %v990_v8 }
 0x18e   : > { %v844_v13 = vadd.f32 %v843_v10, %v803_v9  ;;  %v873_v2 = vpop.f32.mrf.mxu0 }
 0x18f   : > { %1044 = vmatpush.xpose.msrb.mxu2 %v1017_v12  ;;  %v1018_v14 = vand.u32 4294901760, %v1017_v12 }
 0x190   : > { %v874_v15 = vadd.f32 %v873_v2, %v844_v13  ;;  %997 = vmatmul.f32.vlgmr.msrb.gmra.mxu0 %v996_v11  ;;  %1071 = vmatmul.f32.vlgmr.msrb.gmra.mxu3 %v994_v60  ;;  %v900_v16 = vpop.f32.mrf.mxu1 }
 0x191   : > { %1093 = vmatpush.xpose.msra.mxu0 %v1018_v14  ;;  %v1019_v17 = vsub.f32 %v1017_v12, %v1018_v14 }
 0x192   : > { %v901_v18 = vadd.f32 %v900_v16, %v874_v15  ;;  %1300 = vrot.lane.b32.xlu1 %v3911_v46, %s3564_s29  ;;  %1047 = vmatmul.f32.vlgmr.msrb.gmra.mxu2 %v993_v55 }
 0x193   : > { %v933_v19 = vpop.f32.mrf.mxu2  ;;  %v1020_v20 = vand.u32 4294901760, %v1019_v17 }
 0x194   : > { %v934_v21 = vadd.f32 %v933_v19, %v901_v18 }
 0x195   : > { %v958_v22 = vpop.f32.mrf.mxu3  ;;  %1021 = vmatpush.xpose.msrb.mxu1 %v1020_v20 }
 0x196   : > { %v3925_v23 = vadd.f32 %v958_v22, %v934_v21 }
 0x198   : > { %v1169_v24 = vand.u32 4294901760, %v3925_v23  ;;  %1023 = vmatmul.f32.vlgmr.msrb.gmra.mxu1 %v992_v51  ;;  %1095 = vmatmul.f32.vlgmr.msra.gmra.mxu0 %v992_v51 }
 0x199   : > { %1115 = vmatpush.xpose.msra.mxu1 %v990_v8 }
 0x19a   : > { %1170 = vmatpush.msra.mxu2 %v1169_v24  ;;  %1933 = vrot.lane.b32.xlu1 %v3917_v1, %s3565_s16  ;;  %v1196_v25 = vsub.f32 %v3925_v23, %v1169_v24 }
 0x19c   : > { %1223 = vmatpush.msrb.mxu0 %v1196_v25  ;;  %v1197_v26 = vand.u32 4294901760, %v1196_v25 }
 0x19d   : > { %1246 = vmatpush.msrb.mxu1 %v1169_v24 }
 0x19e   : > { %v1198_v27 = vsub.f32 %v1196_v25, %v1197_v26  ;;  %1272 = vmatpush.msrb.mxu2 %v1197_v26 }
 0x1a0   : > { %1117 = vmatmul.f32.vlgmr.msra.gmra.mxu1 %v992_v51  ;;  %v1199_v28 = vand.u32 4294901760, %v1198_v27 }
 0x1a2   : > { %1200 = vmatpush.msra.mxu3 %v1199_v28 }
 0x1a4   : > { %1294 = vmatpush.msrb.mxu3 %v1169_v24 }
 0x1fc   : > { %v1303_v29 = vpop.permute.xlu1 %1302 }
 0x1fd   : > { %v1306_v30 = vsel %vm968_vm3, %v1303_v29, 0 }
 0x1fe   : > { %v3932_v31 = vand.u32 4294901760, %v1306_v30 }
 0x200   : > { %v3935_v32 = vsub.f32 %v1306_v30, %v3932_v31  ;;  %1324 = vmatpush.xpose.msra.mxu0 %v3932_v31 }
 0x202   : > { %v1351_v33 = vand.u32 4294901760, %v3935_v32 }
 0x204   : > { %v1352_v34 = vsub.f32 %v3935_v32, %v1351_v33  ;;  %v1301_v62 = vpop.permute.xlu1 %1300 }
 0x205   : > { %v1304_v63 = vsel %vm968_vm3, %v1301_v62, 0 }
 0x206   : > { %v1353_v35 = vand.u32 4294901760, %v1352_v34  ;;  %v1325_v9 = vand.u32 4294901760, %v1304_v63 }
 0x208   : > { %1354 = vmatpush.xpose.msra.mxu1 %v1353_v35  ;;  %v1326_v13 = vsub.f32 %v1304_v63, %v1325_v9 }
 0x20a   : > { %v1327_v18 = vand.u32 4294901760, %v1326_v13 }
 0x20c   : > { %v1328_v24 = vsub.f32 %v1326_v13, %v1327_v18 }
 0x20d   : > { %v998_v36 = vpop.f32.mrf.mxu0 }
 0x20e   : > { %v1329_v29 = vand.u32 4294901760, %v1328_v24 }
 0x213   : > { %v1072_v40 = vpop.f32.mrf.mxu3 }
 0x215   : > { %v1024_v37 = vpop.f32.mrf.mxu1  ;;  %v1048_v38 = vpop.f32.mrf.mxu2 }
 0x216   : > { %v1025_v39 = vadd.f32 %v1024_v37, %v998_v36  ;;  %v1096_v43 = vpop.f32.mrf.mxu0 }
 0x218   : > { %v1049_v42 = vadd.f32 %v1048_v38, %v1025_v39 }
 0x21a   : > { %v1073_v44 = vadd.f32 %v1072_v40, %v1049_v42 }
 0x21c   : > { %v1097_v47 = vadd.f32 %v1096_v43, %v1073_v44 }
 0x21d   : > { %v1118_v48 = vpop.f32.mrf.mxu1 }
 0x21e   : > { %v1119_v49 = vadd.f32 %v1118_v48, %v1097_v47 }
 0x220   : > { %v1121_v51 = vmul.f32 0.35355338, %v1119_v49 }
 0x222   : > { %v1125_v52 = vadd.f32 %v3944_v50, %v1121_v51 }
 0x224   : > { %v1127_v53 = vsel %vm1126_vm4, %v1125_v52, -inf }
 0x225   : > { %1128 = vmax.xlane.f32.xlu0 %v1127_v53 }
 0x298   : > { %v1129_v54 = vpop.xlane.xlu0 %1128 }
 0x299   : > { %v1130_v55 = vsub.f32 %v1125_v52, %v1129_v54 }
 0x29b   : > { %v1131_v56 = vmul.f32 1.442695, %v1130_v55 }
 0x29d   : > { %3258 = vpow2.f32 %v1131_v56 }
 0x2a3   : > { %v3259_v57 = vpop.eup %3258 }
 0x2a4   : > { %v1133_v58 = vsel %vm1126_vm4, %v3259_v57, 0.0 }
 0x2a5   : > { %1134 = vadd.xlane.f32.xlu0 %v1133_v58 }
 0x2b9   : > { %1481 = vrot.lane.b32.xlu0 %v3925_v23, %s3564_s29 }
 0x318   : > { %v1135_v59 = vpop.xlane.xlu0 %1134 }
 0x319   : > { %3260 = vrcp.f32 %v1135_v59  ;;  %v1147_v6 = vand.u32 2147483648, %v1135_v59  ;;  %v1145_v8 = vand.u32 2147483647, %v1135_v59  ;;  %vm1141_vm6 = vweird.f32 %v1135_v59 }
 0x31b   : > { %v1148_v11 = vor.u32 1.1754944e-38, %v1147_v6  ;;  %vm1146_vm8 = vcmp.eq.f32.partialorder %v1145_v8, 8.507059e+37 }
 0x31f   : > { %v3261_v60 = vpop.eup %3260 }
 0x320   : > { %v1137_v61 = vmul.f32 %v3261_v60, %v1135_v59  ;;  %vm1142_vm5 = vweird.f32 %v3261_v60 }
 0x321   : > { %vm1143_vm7 = vmor %vm1141_vm6, %vm1142_vm5 }
 0x322   : > { %v1138_v0 = vsub.f32 1.0, %v1137_v61 }
 0x324   : > { %v1139_v7 = vmul.f32 %v3261_v60, %v1138_v0 }
 0x326   : > { %v1140_v10 = vadd.f32 %v3261_v60, %v1139_v7 }
 0x328   : > { %v1144_v12 = vsel %vm1143_vm7, %v3261_v60, %v1140_v10 }
 0x329   : > { %v1149_v2 = vsel %vm1146_vm8, %v1148_v11, %v1144_v12 }
 0x32a   : > { %v1150_v14 = vmul.f32 %v3259_v57, %v1149_v2 }
 0x32b   : > { %v1482_v15 = vpop.permute.xlu0 %1481 }
 0x32c   : > { %v1502_v16 = vand.u32 4294901760, %v1482_v15  ;;  %v1152_v17 = vsel %vm968_vm3, %v1150_v14, 0 }
 0x32d   : > { %v1171_v19 = vand.u32 4294901760, %v1152_v17 }
 0x32e   : > { %v1529_v20 = vsub.f32 %v1482_v15, %v1502_v16 }
 0x32f   : > { %1202 = vmatmul.f32.vlgmr.msra.gmra.mxu3 %v1171_v19  ;;  %v1172_v21 = vsub.f32 %v1152_v17, %v1171_v19 }
 0x330   : > { %v1530_v22 = vand.u32 4294901760, %v1529_v20  ;;  %1400 = vmatpush.xpose.msra.mxu3 %v3932_v31 }
 0x331   : > { %1226 = vmatmul.f32.vlgmr.msrb.gmra.mxu0 %v1172_v21  ;;  %v1173_v25 = vand.u32 4294901760, %v1172_v21 }
 0x332   : > { %v1531_v26 = vsub.f32 %v1529_v20, %v1530_v22  ;;  %1426 = vmatpush.xpose.msrb.mxu0 %v1351_v33 }
 0x333   : > { %1250 = vmatmul.f32.vlgmr.msrb.gmra.mxu1 %v1173_v25  ;;  %v1174_v27 = vsub.f32 %v1172_v21, %v1173_v25 }
 0x334   : > { %v1532_v28 = vand.u32 4294901760, %v1531_v26  ;;  %1448 = vmatpush.xpose.msrb.mxu1 %v3932_v31  ;;  %v962_v26 = vld [vmem:[#allocation9 + $0x60] sm:$0xff] }
 0x335   : > { %v1175_v30 = vand.u32 4294901760, %v1174_v27  ;;  %v1800_v27 = vand.u32 4294901760, %v962_v26 }
 0x337   : > { %1176 = vmatmul.f32.vlgmr.msra.gmra.mxu2 %v1175_v30  ;;  %1296 = vmatmul.f32.vlgmr.msrb.gmra.mxu3 %v1171_v19 }
 0x338   : > { %1377 = vmatpush.xpose.msra.mxu2 %v3935_v32  ;;  %1533 = vmatpush.msrb.mxu3 %v1532_v28  ;;  %v1827_v28 = vsub.f32 %v962_v26, %v1800_v27 }
 0x339   : > { %1330 = vmatmul.f32.vlgmr.msra.gmra.mxu0 %v1329_v29 }
 0x33a   : > { %1556 = vmatpush.msra.mxu0 %v1529_v20  ;;  %v1828_v29 = vand.u32 4294901760, %v1827_v28 }
 0x33b   : > { %1356 = vmatmul.f32.vlgmr.msra.gmra.mxu1 %v1325_v9 }
 0x33c   : > { %1579 = vmatpush.msra.mxu1 %v1502_v16  ;;  %v1829_v30 = vsub.f32 %v1827_v28, %v1828_v29 }
 0x33f   : > { %1274 = vmatmul.f32.vlgmr.msrb.gmra.mxu2 %v1171_v19  ;;  %1404 = vmatmul.f32.vlgmr.msra.gmra.mxu3 %v1327_v18  ;;  %v963_v19 = vld [vmem:[#allocation9 + $0x68] sm:$0xff] }
 0x340   : > { %1503 = vmatpush.msrb.mxu2 %v1502_v16  ;;  %1627 = vmatpush.msra.mxu3 %v1502_v16  ;;  %v1651_v20 = vand.u32 4294901760, %v963_v19 }
 0x341   : > { %1428 = vmatmul.f32.vlgmr.msrb.gmra.mxu0 %v1325_v9 }
 0x342   : > { %v1678_v21 = vsub.f32 %v963_v19, %v1651_v20  ;;  %1652 = vmatpush.msrb.mxu0 %v1651_v20 }
 0x343   : > { %1450 = vmatmul.f32.vlgmr.msrb.gmra.mxu1 %v1325_v9 }
 0x347   : > { %1380 = vmatmul.f32.vlgmr.msra.gmra.mxu2 %v1326_v13 }
 0x348   : > { %1605 = vmatpush.msra.mxu2 %v1530_v22  ;;  %v1679_v22 = vand.u32 4294901760, %v1678_v21 }
 0x34a   : > { %v1680_v24 = vsub.f32 %v1678_v21, %v1679_v22 }
 0x34c   : > { %v1681_v25 = vand.u32 4294901760, %v1680_v24 }
 0x34e   : > { %1682 = vmatpush.msrb.mxu1 %v1681_v25 }
 0x3ae   : > { %v1227_v31 = vpop.f32.mrf.mxu0 }
 0x3b0   : > { %v1251_v36 = vpop.f32.mrf.mxu1 }
 0x3b2   : > { %v1203_v33 = vpop.f32.mrf.mxu3 }
 0x3b6   : > { %v1331_v40 = vpop.f32.mrf.mxu0 }
 0x3b8   : > { %v1357_v43 = vpop.f32.mrf.mxu1 }
 0x3b9   : > { %v1358_v44 = vadd.f32 %v1357_v43, %v1331_v40 }
 0x3ba   : > { %v1177_v34 = vpop.f32.mrf.mxu2  ;;  %v1297_v41 = vpop.f32.mrf.mxu3 }
 0x3bb   : > { %v1204_v35 = vadd.f32 %v1203_v33, %v1177_v34 }
 0x3bd   : > { %v1228_v37 = vadd.f32 %v1227_v31, %v1204_v35  ;;  %v1830_v31 = vand.u32 4294901760, %v1829_v30  ;;  %v1934_v35 = vpop.permute.xlu1 %1933 }
 0x3be   : > { %v1429_v51 = vpop.f32.mrf.mxu0 }
 0x3bf   : > { %v1252_v32 = vadd.f32 %v1251_v36, %v1228_v37 }
 0x3c0   : > { %v1451_v53 = vpop.f32.mrf.mxu1 }
 0x3c2   : > { %v1275_v38 = vpop.f32.mrf.mxu2  ;;  %v1405_v48 = vpop.f32.mrf.mxu3 }
 0x3c3   : > { %v1276_v39 = vadd.f32 %v1275_v38, %v1252_v32  ;;  %v1937_v38 = vsel %vm968_vm3, %v1934_v35, 0 }
 0x3c4   : > { %v1954_v43 = vand.u32 4294901760, %v1937_v38 }
 0x3c5   : > { %v3958_v42 = vadd.f32 %v1297_v41, %v1276_v39 }
 0x3c7   : > { %v1783_v39 = vsel %vm968_vm3, %v3958_v42, 0 }
 0x3ca   : > { %v1381_v45 = vpop.f32.mrf.mxu2 }
 0x3cb   : > { %v1382_v47 = vadd.f32 %v1381_v45, %v1358_v44  ;;  %v1802_v45 = vand.u32 4294901760, %v1783_v39 }
 0x3cd   : > { %v1406_v49 = vadd.f32 %v1405_v48, %v1382_v47 }
 0x3cf   : > { %v1430_v52 = vadd.f32 %v1429_v51, %v1406_v49  ;;  %v1981_v51 = vsub.f32 %v1937_v38, %v1954_v43 }
 0x3d1   : > { %v1452_v54 = vadd.f32 %v1451_v53, %v1430_v52  ;;  %v1803_v53 = vsub.f32 %v1783_v39, %v1802_v45 }
 0x3d3   : > { %v1454_v55 = vmul.f32 0.35355338, %v1452_v54 }
 0x3d5   : > { %v1455_v56 = vadd.f32 %v1454_v55, %v3944_v50 }
 0x3d7   : > { %v1456_v57 = vsel %vm1126_vm4, %v1455_v56, -inf }
 0x3d8   : > { %1457 = vmax.xlane.f32.xlu2 %v1456_v57 }
 0x44b   : > { %v1458_v58 = vpop.xlane.xlu2 %1457 }
 0x44c   : > { %v1459_v59 = vsub.f32 %v1455_v56, %v1458_v58  ;;  %v1982_v56 = vand.u32 4294901760, %v1981_v51 }
 0x44e   : > { %v1460_v60 = vmul.f32 1.442695, %v1459_v59  ;;  %v1804_v59 = vand.u32 4294901760, %v1803_v53 }
 0x450   : > { %3262 = vpow2.f32 %v1460_v60  ;;  %v1983_v60 = vsub.f32 %v1981_v51, %v1982_v56 }
 0x456   : > { %v3263_v61 = vpop.eup %3262 }
 0x457   : > { %v1462_v62 = vsel %vm1126_vm4, %v3263_v61, 0.0 }
 0x458   : > { %1463 = vadd.xlane.f32.xlu2 %v1462_v62 }
 0x470   : > { %1931 = vrot.lane.b32.xlu2 %v3911_v46, %s3565_s16 }
 0x478   : > { %2111 = vrot.lane.b32.xlu2 %v3925_v23, %s3565_s16 }
 0x480   : > { %2415 = vrot.lane.b32.xlu2 %v3917_v1, %s3566_s6 }
 0x488   : > { %2413 = vrot.lane.b32.xlu2 %v3911_v46, %s3566_s6 }
 0x4cb   : > { %v1464_v63 = vpop.xlane.xlu2 %1463 }
 0x4cc   : > { %3264 = vrcp.f32 %v1464_v63  ;;  %v1476_v8 = vand.u32 2147483648, %v1464_v63  ;;  %v1474_v10 = vand.u32 2147483647, %v1464_v63  ;;  %vm1470_vm10 = vweird.f32 %v1464_v63 }
 0x4ce   : > { %v1477_v12 = vor.u32 1.1754944e-38, %v1476_v8  ;;  %vm1475_vm12 = vcmp.eq.f32.partialorder %v1474_v10, 8.507059e+37 }
 0x4d2   : > { %v3265_v0 = vpop.eup %3264 }
 0x4d3   : > { %v1466_v6 = vmul.f32 %v3265_v0, %v1464_v63  ;;  %vm1471_vm9 = vweird.f32 %v3265_v0  ;;  %v1932_v40 = vpop.permute.xlu2 %1931  ;;  %v1805_v63 = vsub.f32 %v1803_v53, %v1804_v59 }
 0x4d4   : > { %vm1472_vm11 = vmor %vm1470_vm10, %vm1471_vm9 }
 0x4d5   : > { %v1467_v7 = vsub.f32 1.0, %v1466_v6  ;;  %v1984_v6 = vand.u32 4294901760, %v1983_v60  ;;  %v1806_v8 = vand.u32 4294901760, %v1805_v63  ;;  %v964_v60 = vld [vmem:[#allocation9 + $0x70] sm:$0xff] }
 0x4d7   : > { %v1468_v9 = vmul.f32 %v3265_v0, %v1467_v7 }
 0x4d9   : > { %v1469_v11 = vadd.f32 %v3265_v0, %v1468_v9  ;;  %v1935_v9 = vsel %vm968_vm3, %v1932_v40, 0 }
 0x4db   : > { %v1473_v13 = vsel %vm1472_vm11, %v3265_v0, %v1469_v11  ;;  %v2112_v57 = vpop.permute.xlu2 %2111  ;;  %v1956_v11 = vand.u32 4294901760, %v1935_v9 }
 0x4dc   : > { %v1478_v2 = vsel %vm1475_vm12, %v1477_v12, %v1473_v13 }
 0x4dd   : > { %v1479_v1 = vmul.f32 %v3263_v61, %v1478_v2  ;;  %v2132_v61 = vand.u32 4294901760, %v2112_v57  ;;  %v1957_v13 = vsub.f32 %v1935_v9, %v1956_v11 }
 0x4df   : > { %v1485_v14 = vsel %vm968_vm3, %v1479_v1, 0  ;;  %v2159_v7 = vsub.f32 %v2112_v57, %v2132_v61  ;;  %v1958_v1 = vand.u32 4294901760, %v1957_v13 }
 0x4e0   : > { %v1504_v46 = vand.u32 4294901760, %v1485_v14 }
 0x4e1   : > { %v2160_v10 = vand.u32 4294901760, %v2159_v7 }
 0x4e2   : > { %1535 = vmatmul.f32.vlgmr.msrb.gmra.mxu3 %v1504_v46  ;;  %v1505_v15 = vsub.f32 %v1485_v14, %v1504_v46  ;;  %v1959_v14 = vsub.f32 %v1957_v13, %v1958_v1 }
 0x4e3   : > { %1728 = vmatpush.msrb.mxu3 %v1651_v20  ;;  %v2161_v12 = vsub.f32 %v2159_v7, %v2160_v10 }
 0x4e4   : > { %1559 = vmatmul.f32.vlgmr.msra.gmra.mxu0 %v1505_v15  ;;  %v1506_v16 = vand.u32 4294901760, %v1505_v15 }
 0x4e5   : > { %1754 = vmatpush.msra.mxu0 %v1679_v22  ;;  %v2162_v2 = vand.u32 4294901760, %v2161_v12 }
 0x4e6   : > { %1583 = vmatmul.f32.vlgmr.msra.gmra.mxu1 %v1506_v16  ;;  %v1507_v17 = vsub.f32 %v1505_v15, %v1506_v16 }
 0x4e7   : > { %1776 = vmatpush.msra.mxu1 %v1651_v20 }
 0x4e8   : > { %v1508_v18 = vand.u32 4294901760, %v1507_v17 }
 0x4ea   : > { %1509 = vmatmul.f32.vlgmr.msrb.gmra.mxu2 %v1508_v18  ;;  %1629 = vmatmul.f32.vlgmr.msra.gmra.mxu3 %v1504_v46 }
 0x4eb   : > { %1705 = vmatpush.msrb.mxu2 %v1678_v21  ;;  %1831 = vmatpush.msra.mxu3 %v1830_v31 }
 0x4f2   : > { %1607 = vmatmul.f32.vlgmr.msra.gmra.mxu2 %v1504_v46  ;;  %v1960_v46 = vand.u32 4294901760, %v1959_v14 }
 0x4f3   : > { %1801 = vmatpush.msra.mxu2 %v1800_v27 }
 0x561   : > { %v1560_v37 = vpop.f32.mrf.mxu0 }
 0x563   : > { %v1584_v41 = vpop.f32.mrf.mxu1 }
 0x565   : > { %v1536_v33 = vpop.f32.mrf.mxu3 }
 0x56d   : > { %v1510_v34 = vpop.f32.mrf.mxu2  ;;  %v1630_v49 = vpop.f32.mrf.mxu3 }
 0x56e   : > { %v1537_v36 = vadd.f32 %v1536_v33, %v1510_v34 }
 0x570   : > { %v1561_v32 = vadd.f32 %v1560_v37, %v1537_v36 }
 0x572   : > { %v1585_v44 = vadd.f32 %v1584_v41, %v1561_v32 }
 0x575   : > { %v1608_v47 = vpop.f32.mrf.mxu2 }
 0x576   : > { %v1609_v48 = vadd.f32 %v1608_v47, %v1585_v44 }
 0x578   : > { %v1631_v52 = vadd.f32 %v1630_v49, %v1609_v48 }
 0x57a   : > { %v1634_v54 = vsel %vm968_vm3, %v1631_v52, 0 }
 0x57b   : > { %v1653_v55 = vand.u32 4294901760, %v1634_v54 }
 0x57d   : > { %v1654_v58 = vsub.f32 %v1634_v54, %v1653_v55  ;;  %1684 = vmatmul.f32.vlgmr.msrb.gmra.mxu1 %v1653_v55 }
 0x57e   : > { %1877 = vmatpush.msrb.mxu1 %v1800_v27 }
 0x57f   : > { %1708 = vmatmul.f32.vlgmr.msrb.gmra.mxu2 %v1654_v58  ;;  %v1655_v42 = vand.u32 4294901760, %v1654_v58 }
 0x580   : > { %1903 = vmatpush.msrb.mxu2 %v1828_v29 }
 0x581   : > { %1732 = vmatmul.f32.vlgmr.msrb.gmra.mxu3 %v1655_v42  ;;  %v1656_v62 = vsub.f32 %v1654_v58, %v1655_v42 }
 0x582   : > { %1925 = vmatpush.msrb.mxu3 %v1800_v27 }
 0x583   : > { %v1657_v0 = vand.u32 4294901760, %v1656_v62 }
 0x585   : > { %1658 = vmatmul.f32.vlgmr.msrb.gmra.mxu0 %v1657_v0  ;;  %1778 = vmatmul.f32.vlgmr.msra.gmra.mxu1 %v1653_v55  ;;  %v2416_v0 = vpop.permute.xlu2 %2415 }
 0x586   : > { %1985 = vmatpush.xpose.msra.mxu1 %v1984_v6  ;;  %1854 = vmatpush.msrb.mxu0 %v1827_v28 }
 0x587   : > { %1807 = vmatmul.f32.vlgmr.msra.gmra.mxu2 %v1806_v8  ;;  %v2419_v8 = vsel %vm968_vm3, %v2416_v0, 0 }
 0x588   : > { %2008 = vmatpush.xpose.msra.mxu2 %v1981_v51  ;;  %v3983_v12 = vand.u32 4294901760, %v2419_v8 }
 0x589   : > { %1833 = vmatmul.f32.vlgmr.msra.gmra.mxu3 %v1802_v45 }
 0x58a   : > { %2031 = vmatpush.xpose.msra.mxu3 %v1954_v43 }
 0x58d   : > { %1756 = vmatmul.f32.vlgmr.msra.gmra.mxu0 %v1653_v55  ;;  %1881 = vmatmul.f32.vlgmr.msrb.gmra.mxu1 %v1804_v59 }
 0x58e   : > { %1955 = vmatpush.xpose.msra.mxu0 %v1954_v43  ;;  %2079 = vmatpush.xpose.msrb.mxu1 %v1954_v43 }
 0x58f   : > { %1905 = vmatmul.f32.vlgmr.msrb.gmra.mxu2 %v1802_v45 }
 0x590   : > { %2133 = vmatpush.msrb.mxu2 %v2132_v61 }
 0x591   : > { %1927 = vmatmul.f32.vlgmr.msrb.gmra.mxu3 %v1802_v45 }
 0x592   : > { %2163 = vmatpush.msrb.mxu3 %v2162_v2 }
 0x595   : > { %1857 = vmatmul.f32.vlgmr.msrb.gmra.mxu0 %v1803_v53  ;;  %1987 = vmatmul.f32.vlgmr.msra.gmra.mxu1 %v1956_v11 }
 0x596   : > { %2057 = vmatpush.xpose.msrb.mxu0 %v1982_v56  ;;  %2209 = vmatpush.msra.mxu1 %v2132_v61 }
 0x597   : > { %2011 = vmatmul.f32.vlgmr.msra.gmra.mxu2 %v1957_v13 }
 0x598   : > { %2235 = vmatpush.msra.mxu2 %v2160_v10 }
 0x599   : > { %2035 = vmatmul.f32.vlgmr.msra.gmra.mxu3 %v1958_v1 }
 0x59a   : > { %2257 = vmatpush.msra.mxu3 %v2132_v61  ;;  %v2281_v61 = vand.u32 4294901760, %v964_v60 }
 0x59d   : > { %1961 = vmatmul.f32.vlgmr.msra.gmra.mxu0 %v1960_v46  ;;  %2081 = vmatmul.f32.vlgmr.msrb.gmra.mxu1 %v1956_v11  ;;  %v2463_v46 = vsub.f32 %v2419_v8, %v3983_v12 }
 0x59e   : > { %2186 = vmatpush.msra.mxu0 %v2159_v7 }
 0x5a5   : > { %2059 = vmatmul.f32.vlgmr.msrb.gmra.mxu0 %v1956_v11 }
 0x5a6   : > { %2282 = vmatpush.msrb.mxu0 %v2281_v61 }
 0x5fa   : > { %v1685_v15 = vpop.f32.mrf.mxu1 }
 0x602   : > { %v1659_v16 = vpop.f32.mrf.mxu0  ;;  %v1709_v17 = vpop.f32.mrf.mxu2 }
 0x603   : > { %v1686_v18 = vadd.f32 %v1685_v15, %v1659_v16  ;;  %v1779_v21 = vpop.f32.mrf.mxu1 }
 0x604   : > { %v1733_v19 = vpop.f32.mrf.mxu3 }
 0x605   : > { %v1710_v20 = vadd.f32 %v1709_v17, %v1686_v18  ;;  %v2464_v18 = vand.u32 4294901760, %v2463_v46 }
 0x607   : > { %v1734_v22 = vadd.f32 %v1733_v19, %v1710_v20 }
 0x60a   : > { %v1757_v24 = vpop.f32.mrf.mxu0  ;;  %v1808_v25 = vpop.f32.mrf.mxu2 }
 0x60b   : > { %v1758_v26 = vadd.f32 %v1757_v24, %v1734_v22  ;;  %v1882_v30 = vpop.f32.mrf.mxu1  ;;  %v2308_v24 = vsub.f32 %v964_v60, %v2281_v61 }
 0x60c   : > { %v1834_v27 = vpop.f32.mrf.mxu3 }
 0x60d   : > { %v1780_v28 = vadd.f32 %v1779_v21, %v1758_v26  ;;  %v2465_v21 = vsub.f32 %v2463_v46, %v2464_v18 }
 0x60f   : > { %v1809_v29 = vadd.f32 %v1808_v25, %v1780_v28  ;;  %v2466_v26 = vand.u32 4294901760, %v2465_v21 }
 0x611   : > { %v1835_v31 = vadd.f32 %v1834_v27, %v1809_v29  ;;  %v2309_v27 = vand.u32 4294901760, %v2308_v24 }
 0x612   : > { %v1858_v33 = vpop.f32.mrf.mxu0  ;;  %v1906_v34 = vpop.f32.mrf.mxu2 }
 0x613   : > { %v1859_v35 = vadd.f32 %v1858_v33, %v1835_v31  ;;  %v1988_v39 = vpop.f32.mrf.mxu1  ;;  %v2310_v28 = vsub.f32 %v2308_v24, %v2309_v27 }
 0x614   : > { %v1928_v37 = vpop.f32.mrf.mxu3 }
 0x615   : > { %v1883_v36 = vadd.f32 %v1882_v30, %v1859_v35  ;;  %v2311_v29 = vand.u32 4294901760, %v2310_v28  ;;  %v2414_v30 = vpop.permute.xlu2 %2413 }
 0x617   : > { %v1907_v32 = vadd.f32 %v1906_v34, %v1883_v36  ;;  %2312 = vmatpush.msrb.mxu1 %v2311_v29 }
 0x619   : > { %v3977_v38 = vadd.f32 %v1928_v37, %v1907_v32  ;;  %v2417_v37 = vsel %vm968_vm3, %v2414_v30, 0 }
 0x61a   : > { %v1962_v40 = vpop.f32.mrf.mxu0  ;;  %v2012_v43 = vpop.f32.mrf.mxu2 }
 0x61b   : > { %v1989_v41 = vadd.f32 %v1988_v39, %v1962_v40  ;;  %v2082_v51 = vpop.f32.mrf.mxu1  ;;  %v2438_v39 = vand.u32 4294901760, %v2417_v37 }
 0x61c   : > { %v2036_v45 = vpop.f32.mrf.mxu3 }
 0x61d   : > { %v2013_v44 = vadd.f32 %v2012_v43, %v1989_v41 }
 0x61f   : > { %v2037_v47 = vadd.f32 %v2036_v45, %v2013_v44  ;;  %v2439_v45 = vsub.f32 %v2417_v37, %v2438_v39 }
 0x622   : > { %v2060_v48 = vpop.f32.mrf.mxu0 }
 0x623   : > { %v2061_v49 = vadd.f32 %v2060_v48, %v2037_v47 }
 0x625   : > { %v2083_v52 = vadd.f32 %v2082_v51, %v2061_v49  ;;  %v2440_v51 = vand.u32 4294901760, %v2439_v45 }
 0x627   : > { %v2085_v53 = vmul.f32 0.35355338, %v2083_v52 }
 0x629   : > { %v2086_v54 = vadd.f32 %v2085_v53, %v3944_v50  ;;  %v2441_v53 = vsub.f32 %v2439_v45, %v2440_v51 }
 0x62b   : > { %v2087_v55 = vsel %vm1126_vm4, %v2086_v54, -inf }
 0x62c   : > { %2088 = vmax.xlane.f32.xlu1 %v2087_v55 }
 0x69f   : > { %v2089_v56 = vpop.xlane.xlu1 %2088 }
 0x6a0   : > { %v2090_v57 = vsub.f32 %v2086_v54, %v2089_v56  ;;  %v2442_v56 = vand.u32 4294901760, %v2441_v53 }
 0x6a2   : > { %v2091_v58 = vmul.f32 1.442695, %v2090_v57 }
 0x6a4   : > { %3266 = vpow2.f32 %v2091_v58 }
 0x6aa   : > { %v3267_v59 = vpop.eup %3266 }
 0x6ab   : > { %v2093_v42 = vsel %vm1126_vm4, %v3267_v59, 0.0 }
 0x6ac   : > { %2094 = vadd.xlane.f32.xlu0 %v2093_v42 }
 0x71f   : > { %v2095_v62 = vpop.xlane.xlu0 %2094 }
 0x720   : > { %3268 = vrcp.f32 %v2095_v62  ;;  %v2107_v9 = vand.u32 2147483648, %v2095_v62  ;;  %v2105_v11 = vand.u32 2147483647, %v2095_v62  ;;  %vm2101_vm14 = vweird.f32 %v2095_v62 }
 0x722   : > { %v2108_v2 = vor.u32 1.1754944e-38, %v2107_v9  ;;  %vm2106_vm0 = vcmp.eq.f32.partialorder %v2105_v11, 8.507059e+37 }
 0x726   : > { %v3269_v63 = vpop.eup %3268 }
 0x727   : > { %v2097_v6 = vmul.f32 %v3269_v63, %v2095_v62  ;;  %vm2102_vm13 = vweird.f32 %v3269_v63 }
 0x728   : > { %vm2103_vm15 = vmor %vm2101_vm14, %vm2102_vm13 }
 0x729   : > { %v2098_v7 = vsub.f32 1.0, %v2097_v6 }
 0x72b   : > { %v2099_v10 = vmul.f32 %v3269_v63, %v2098_v7 }
 0x72d   : > { %v2100_v13 = vadd.f32 %v3269_v63, %v2099_v10 }
 0x72f   : > { %v2104_v1 = vsel %vm2103_vm15, %v3269_v63, %v2100_v13 }
 0x730   : > { %v2109_v14 = vsel %vm2106_vm0, %v2108_v2, %v2104_v1 }
 0x731   : > { %v2110_v15 = vmul.f32 %v3267_v59, %v2109_v14 }
 0x733   : > { %v2115_v16 = vsel %vm968_vm3, %v2110_v15, 0 }
 0x734   : > { %v2134_v17 = vand.u32 4294901760, %v2115_v16 }
 0x736   : > { %2165 = vmatmul.f32.vlgmr.msrb.gmra.mxu3 %v2134_v17  ;;  %v2135_v19 = vsub.f32 %v2115_v16, %v2134_v17 }
 0x737   : > { %2358 = vmatpush.msrb.mxu3 %v2281_v61 }
 0x738   : > { %2189 = vmatmul.f32.vlgmr.msra.gmra.mxu0 %v2135_v19  ;;  %v2136_v20 = vand.u32 4294901760, %v2135_v19 }
 0x739   : > { %2384 = vmatpush.msra.mxu0 %v2309_v27 }
 0x73a   : > { %2213 = vmatmul.f32.vlgmr.msra.gmra.mxu1 %v2136_v20  ;;  %v2137_v22 = vsub.f32 %v2135_v19, %v2136_v20 }
 0x73b   : > { %2406 = vmatpush.msra.mxu1 %v2281_v61 }
 0x73c   : > { %v2138_v25 = vand.u32 4294901760, %v2137_v22 }
 0x73e   : > { %2139 = vmatmul.f32.vlgmr.msrb.gmra.mxu2 %v2138_v25  ;;  %2259 = vmatmul.f32.vlgmr.msra.gmra.mxu3 %v2134_v17 }
 0x73f   : > { %2467 = vmatpush.xpose.msra.mxu3 %v2466_v26  ;;  %2335 = vmatpush.msrb.mxu2 %v2308_v24 }
 0x746   : > { %2237 = vmatmul.f32.vlgmr.msra.gmra.mxu2 %v2134_v17 }
 0x747   : > { %2437 = vmatpush.xpose.msra.mxu2 %v3983_v12 }
 0x7b5   : > { %v2190_v35 = vpop.f32.mrf.mxu0 }
 0x7b7   : > { %v2214_v32 = vpop.f32.mrf.mxu1 }
 0x7b9   : > { %v2166_v31 = vpop.f32.mrf.mxu3 }
 0x7c1   : > { %v2140_v33 = vpop.f32.mrf.mxu2  ;;  %v2260_v44 = vpop.f32.mrf.mxu3 }
 0x7c2   : > { %v2167_v34 = vadd.f32 %v2166_v31, %v2140_v33 }
 0x7c4   : > { %v2191_v36 = vadd.f32 %v2190_v35, %v2167_v34 }
 0x7c6   : > { %v2215_v40 = vadd.f32 %v2214_v32, %v2191_v36 }
 0x7c9   : > { %v2238_v41 = vpop.f32.mrf.mxu2 }
 0x7ca   : > { %v2239_v43 = vadd.f32 %v2238_v41, %v2215_v40 }
 0x7cc   : > { %v2261_v47 = vadd.f32 %v2260_v44, %v2239_v43 }
 0x7ce   : > { %v2264_v48 = vsel %vm968_vm3, %v2261_v47, 0 }
 0x7cf   : > { %v2283_v49 = vand.u32 4294901760, %v2264_v48 }
 0x7d1   : > { %v2284_v52 = vsub.f32 %v2264_v48, %v2283_v49  ;;  %2314 = vmatmul.f32.vlgmr.msrb.gmra.mxu1 %v2283_v49 }
 0x7d2   : > { %2513 = vmatpush.xpose.msrb.mxu1 %v3983_v12 }
 0x7d3   : > { %2338 = vmatmul.f32.vlgmr.msrb.gmra.mxu2 %v2284_v52  ;;  %v2285_v54 = vand.u32 4294901760, %v2284_v52 }
 0x7d4   : > { %2539 = vmatpush.xpose.msrb.mxu2 %v2464_v18 }
 0x7d5   : > { %2362 = vmatmul.f32.vlgmr.msrb.gmra.mxu3 %v2285_v54  ;;  %v2286_v55 = vsub.f32 %v2284_v52, %v2285_v54  ;;  %v965_v52 = vld [vmem:[#allocation9 + $0x78] sm:$0xff] }
 0x7d6   : > { %2561 = vmatpush.xpose.msrb.mxu3 %v3983_v12  ;;  %v2763_v53 = vand.u32 4294901760, %v965_v52 }
 0x7d7   : > { %v2287_v57 = vand.u32 4294901760, %v2286_v55 }
 0x7d8   : > { %v2790_v54 = vsub.f32 %v965_v52, %v2763_v53  ;;  %v2929_v52 = vperm.slane %v3824_v5, 0 }
 0x7d9   : > { %2288 = vmatmul.f32.vlgmr.msrb.gmra.mxu0 %v2287_v57  ;;  %2408 = vmatmul.f32.vlgmr.msra.gmra.mxu1 %v2283_v49 }
 0x7da   : > { %2490 = vmatpush.xpose.msrb.mxu0 %v2463_v46  ;;  %v2791_v55 = vand.u32 4294901760, %v2790_v54 }
 0x7db   : > { %2443 = vmatmul.f32.vlgmr.msra.gmra.mxu2 %v2442_v56 }
 0x7dc   : > { %v2792_v56 = vsub.f32 %v2790_v54, %v2791_v55 }
 0x7dd   : > { %2469 = vmatmul.f32.vlgmr.msra.gmra.mxu3 %v2438_v39 }
 0x7de   : > { %v2793_v57 = vand.u32 4294901760, %v2792_v56 }
 0x7e1   : > { %2386 = vmatmul.f32.vlgmr.msra.gmra.mxu0 %v2283_v49  ;;  %2517 = vmatmul.f32.vlgmr.msrb.gmra.mxu1 %v2440_v51 }
 0x7e3   : > { %2541 = vmatmul.f32.vlgmr.msrb.gmra.mxu2 %v2438_v39 }
 0x7e5   : > { %2563 = vmatmul.f32.vlgmr.msrb.gmra.mxu3 %v2438_v39 }
 0x7e9   : > { %2493 = vmatmul.f32.vlgmr.msrb.gmra.mxu0 %v2439_v45 }
 0x84e   : > { %v2315_v58 = vpop.f32.mrf.mxu1 }
 0x856   : > { %v2289_v59 = vpop.f32.mrf.mxu0  ;;  %v2339_v42 = vpop.f32.mrf.mxu2 }
 0x857   : > { %v2316_v60 = vadd.f32 %v2315_v58, %v2289_v59  ;;  %v2409_v0 = vpop.f32.mrf.mxu1 }
 0x858   : > { %v2363_v61 = vpop.f32.mrf.mxu3 }
 0x859   : > { %v2340_v62 = vadd.f32 %v2339_v42, %v2316_v60 }
 0x85b   : > { %v2364_v63 = vadd.f32 %v2363_v61, %v2340_v62 }
 0x85e   : > { %v2387_v6 = vpop.f32.mrf.mxu0  ;;  %v2444_v8 = vpop.f32.mrf.mxu2 }
 0x85f   : > { %v2388_v7 = vadd.f32 %v2387_v6, %v2364_v63  ;;  %v2518_v1 = vpop.f32.mrf.mxu1 }
 0x860   : > { %v2470_v10 = vpop.f32.mrf.mxu3 }
 0x861   : > { %v2410_v9 = vadd.f32 %v2409_v0, %v2388_v7  ;;  %v2471_v12 = vadd.f32 %v2470_v10, %v2444_v8 }
 0x863   : > { %v3993_v11 = vadd.f32 %v2410_v9, %v3977_v38 }
 0x866   : > { %v2494_v13 = vpop.f32.mrf.mxu0  ;;  %v2542_v46 = vpop.f32.mrf.mxu2 }
 0x867   : > { %v2495_v2 = vadd.f32 %v2494_v13, %v2471_v12 }
 0x868   : > { %v2564_v16 = vpop.f32.mrf.mxu3 }
 0x869   : > { %v2519_v14 = vadd.f32 %v2518_v1, %v2495_v2 }
 0x86b   : > { %v2543_v15 = vadd.f32 %v2542_v46, %v2519_v14 }
 0x86d   : > { %v2565_v17 = vadd.f32 %v2564_v16, %v2543_v15 }
 0x86f   : > { %v2567_v18 = vmul.f32 0.35355338, %v2565_v17 }
 0x871   : > { %v2568_v19 = vadd.f32 %v2567_v18, %v3944_v50 }
 0x873   : > { %v2569_v20 = vsel %vm1126_vm4, %v2568_v19, -inf }
 0x874   : > { %2570 = vmax.xlane.f32.xlu2 %v2569_v20 }
 0x8e7   : > { %v2571_v21 = vpop.xlane.xlu2 %2570 }
 0x8e8   : > { %v2572_v22 = vsub.f32 %v2568_v19, %v2571_v21 }
 0x8ea   : > { %v2573_v24 = vmul.f32 1.442695, %v2572_v22 }
 0x8ec   : > { %3270 = vpow2.f32 %v2573_v24 }
 0x8f2   : > { %v3271_v38 = vpop.eup %3270 }
 0x8f3   : > { %v2575_v25 = vsel %vm1126_vm4, %v3271_v38, 0.0 }
 0x8f4   : > { %2576 = vadd.xlane.f32.xlu1 %v2575_v25 }
 0x90d   : > { %2593 = vrot.lane.b32.xlu1 %v3925_v23, %s3566_s6 }
 0x967   : > { %v2577_v26 = vpop.xlane.xlu1 %2576 }
 0x968   : > { %3272 = vrcp.f32 %v2577_v26  ;;  %v2589_v50 = vand.u32 2147483648, %v2577_v26  ;;  %v2587_v31 = vand.u32 2147483647, %v2577_v26  ;;  %vm2583_vm2 = vweird.f32 %v2577_v26 }
 0x96a   : > { %v2590_v34 = vor.u32 1.1754944e-38, %v2589_v50  ;;  %vm2588_vm6 = vcmp.eq.f32.partialorder %v2587_v31, 8.507059e+37 }
 0x96e   : > { %v3273_v27 = vpop.eup %3272 }
 0x96f   : > { %v2579_v28 = vmul.f32 %v3273_v27, %v2577_v26  ;;  %vm2584_vm1 = vweird.f32 %v3273_v27 }
 0x970   : > { %vm2585_vm5 = vmor %vm2583_vm2, %vm2584_vm1 }
 0x971   : > { %v2580_v29 = vsub.f32 1.0, %v2579_v28  ;;  %v3567_v28 = vmov 32.0  }
 0x972   : > { %3274 = vrcp.f32 %v3567_v28 }
 0x973   : > { %v2581_v30 = vmul.f32 %v3273_v27, %v2580_v29 }
 0x975   : > { %v2582_v33 = vadd.f32 %v3273_v27, %v2581_v30 }
 0x977   : > { %v2586_v35 = vsel %vm2585_vm5, %v3273_v27, %v2582_v33 }
 0x978   : > { %v2591_v36 = vsel %vm2588_vm6, %v2590_v34, %v2586_v35  ;;  %v3275_v29 = vpop.eup %3274 }
 0x979   : > { %v2592_v37 = vmul.f32 %v3271_v38, %v2591_v36  ;;  %v2895_v38 = vperm.slane %v3820_v3, 0  ;;  %v2902_v50 = vmul.f32 32.0, %v3275_v29  ;;  %vm2906_vm4 = vweird.f32 %v3275_v29 }
 0x97b   : > { %v2597_v32 = vsel %vm968_vm3, %v2592_v37, 0  ;;  %v2903_v30 = vsub.f32 1.0, %v2902_v50 }
 0x97c   : > { %v2616_v23 = vand.u32 4294901760, %v2597_v32 }
 0x97d   : > { %v2904_v31 = vmul.f32 %v3275_v29, %v2903_v30 }
 0x97e   : > { %v2617_v39 = vsub.f32 %v2597_v32, %v2616_v23 }
 0x97f   : > { %v2594_v40 = vpop.permute.xlu1 %2593  ;;  %v2905_v33 = vadd.f32 %v3275_v29, %v2904_v31 }
 0x980   : > { %v2614_v41 = vand.u32 4294901760, %v2594_v40  ;;  %v2618_v43 = vand.u32 4294901760, %v2617_v39 }
 0x981   : > { %v2907_v34 = vsel %vm2906_vm4, %v3275_v29, %v2905_v33 }
 0x982   : > { %v2641_v44 = vsub.f32 %v2594_v40, %v2614_v41  ;;  %2615 = vmatpush.msra.mxu0 %v2614_v41  ;;  %2691 = vmatpush.msra.mxu3 %v2614_v41  ;;  %v2619_v45 = vsub.f32 %v2617_v39, %v2618_v43 }
 0x983   : > { %2695 = vmatmul.f32.vlgmr.msra.gmra.mxu3 %v2618_v43 }
 0x984   : > { %v2642_v47 = vand.u32 4294901760, %v2641_v44  ;;  %2668 = vmatpush.msra.mxu2 %v2641_v44  ;;  %v2620_v48 = vand.u32 4294901760, %v2619_v45  ;;  %2794 = vmatpush.msrb.mxu3 %v2793_v57 }
 0x985   : > { %2671 = vmatmul.f32.vlgmr.msra.gmra.mxu2 %v2617_v39 }
 0x986   : > { %v2643_v49 = vsub.f32 %v2641_v44, %v2642_v47  ;;  %2621 = vmatmul.f32.vlgmr.msra.gmra.mxu0 %v2620_v48  ;;  %2764 = vmatpush.msrb.mxu2 %v2763_v53  ;;  %v2927_v48 = vperm.slane %v3822_v4, 0 }
 0x987   : > { %2717 = vmatpush.msrb.mxu0 %v2642_v47  ;;  %2888 = vmatpush.msra.mxu3 %v2763_v53 }
 0x988   : > { %v2644_v51 = vand.u32 4294901760, %v2643_v49  ;;  %2866 = vmatpush.msra.mxu2 %v2791_v55 }
 0x989   : > { %2817 = vmatpush.msra.mxu0 %v2790_v54 }
 0x98a   : > { %2645 = vmatpush.msra.mxu1 %v2644_v51 }
 0x98b   : > { %2647 = vmatmul.f32.vlgmr.msra.gmra.mxu1 %v2616_v23 }
 0x98c   : > { %2739 = vmatpush.msrb.mxu1 %v2614_v41 }
 0x98e   : > { %2719 = vmatmul.f32.vlgmr.msrb.gmra.mxu0 %v2616_v23  ;;  %2840 = vmatpush.msra.mxu1 %v2763_v53 }
 0x993   : > { %2741 = vmatmul.f32.vlgmr.msrb.gmra.mxu1 %v2616_v23 }
 0xa03   : > { %v2622_v58 = vpop.f32.mrf.mxu0 }
 0xa06   : > { %v2696_v62 = vpop.f32.mrf.mxu3 }
 0xa08   : > { %v2648_v59 = vpop.f32.mrf.mxu1  ;;  %v2672_v60 = vpop.f32.mrf.mxu2 }
 0xa09   : > { %v2649_v42 = vadd.f32 %v2648_v59, %v2622_v58 }
 0xa0b   : > { %v2673_v61 = vadd.f32 %v2672_v60, %v2649_v42  ;;  %v2720_v0 = vpop.f32.mrf.mxu0 }
 0xa0d   : > { %v2697_v63 = vadd.f32 %v2696_v62, %v2673_v61 }
 0xa0f   : > { %v2721_v6 = vadd.f32 %v2720_v0, %v2697_v63 }
 0xa10   : > { %v2742_v7 = vpop.f32.mrf.mxu1 }
 0xa11   : > { %v2743_v8 = vadd.f32 %v2742_v7, %v2721_v6 }
 0xa13   : > { %v2746_v9 = vsel %vm968_vm3, %v2743_v8, 0  ;;  %vm2897_vm3 = vcmask 257024  }
 0xa14   : > { %v2765_v10 = vand.u32 4294901760, %v2746_v9 }
 0xa16   : > { %v2766_v12 = vsub.f32 %v2746_v9, %v2765_v10  ;;  %2796 = vmatmul.f32.vlgmr.msrb.gmra.mxu3 %v2765_v10 }
 0xa18   : > { %2820 = vmatmul.f32.vlgmr.msra.gmra.mxu0 %v2766_v12  ;;  %v2767_v13 = vand.u32 4294901760, %v2766_v12 }
 0xa1a   : > { %2844 = vmatmul.f32.vlgmr.msra.gmra.mxu1 %v2767_v13  ;;  %v2768_v2 = vsub.f32 %v2766_v12, %v2767_v13 }
 0xa1c   : > { %v2769_v1 = vand.u32 4294901760, %v2768_v2 }
 0xa1e   : > { %2770 = vmatmul.f32.vlgmr.msrb.gmra.mxu2 %v2769_v1  ;;  %2890 = vmatmul.f32.vlgmr.msra.gmra.mxu3 %v2765_v10 }
 0xa26   : > { %2868 = vmatmul.f32.vlgmr.msra.gmra.mxu2 %v2765_v10 }
 0xa95   : > { %v2821_v16 = vpop.f32.mrf.mxu0 }
 0xa97   : > { %v2845_v18 = vpop.f32.mrf.mxu1 }
 0xa99   : > { %v2797_v14 = vpop.f32.mrf.mxu3 }
 0xaa1   : > { %v2771_v46 = vpop.f32.mrf.mxu2  ;;  %v2891_v22 = vpop.f32.mrf.mxu3 }
 0xaa2   : > { %v2798_v15 = vadd.f32 %v2797_v14, %v2771_v46 }
 0xaa4   : > { %v2822_v17 = vadd.f32 %v2821_v16, %v2798_v15 }
 0xaa6   : > { %v2846_v19 = vadd.f32 %v2845_v18, %v2822_v17 }
 0xaa9   : > { %v2869_v20 = vpop.f32.mrf.mxu2 }
 0xaaa   : > { %v2870_v21 = vadd.f32 %v2869_v20, %v2846_v19 }
 0xaac   : > { %v2892_v24 = vadd.f32 %v2891_v22, %v2870_v21 }
 0xaae   : > { %v2894_v25 = vadd.f32 %v2892_v24, %v3993_v11 }
 0xab0   : > { %v2896_v26 = vadd.f32 %v2895_v38, %v2894_v25 }
 0xab2   : > { %v2898_v27 = vsel %vm2897_vm3, %v2896_v26, 0.0 }
 0xab3   : > { %2899 = vadd.xlane.f32.xlu0 %v2898_v27 }
 0xb26   : > { %v2900_v35 = vpop.xlane.xlu0 %2899 }
 0xb27   : > { %v2908_v3 = vmul.f32 %v2907_v34, %v2900_v35 }
 0xb29   : > { %v2909_v36 = vsub.f32 %v2896_v26, %v2908_v3 }
 0xb2b   : > { %v2910_v11 = vmul.f32 %v2909_v36, %v2909_v36 }
 0xb2d   : > { %v2911_v37 = vsel %vm2897_vm3, %v2910_v11, 0.0 }
 0xb2e   : > { %2912 = vadd.xlane.f32.xlu0 %v2911_v37 }
 0xba1   : > { %v2913_v32 = vpop.xlane.xlu0 %2912 }
 0xba2   : > { %v2914_v23 = vmul.f32 %v2913_v32, %v2907_v34 }
 0xba4   : > { %v2915_v39 = vadd.f32 1e-12, %v2914_v23 }
 0xba6   : > { %3276 = vrsqrt.f32 %v2915_v39  ;;  %vm2922_vm8 = vweird.f32 %v2915_v39 }
 0xbac   : > { %v3277_v40 = vpop.eup %3276 }
 0xbad   : > { %v2917_v41 = vmul.f32 %v3277_v40, %v2915_v39  ;;  %vm2923_vm7 = vweird.f32 %v3277_v40 }
 0xbae   : > { %vm2924_vm9 = vmor %vm2922_vm8, %vm2923_vm7 }
 0xbaf   : > { %v2918_v43 = vmul.f32 %v3277_v40, %v2917_v41 }
 0xbb1   : > { %v2919_v44 = vmul.f32 0.5, %v2918_v43 }
 0xbb3   : > { %v2920_v45 = vsub.f32 1.5, %v2919_v44 }
 0xbb5   : > { %v2921_v47 = vmul.f32 %v3277_v40, %v2920_v45 }
 0xbb7   : > { %v2925_v49 = vsel %vm2924_vm9, %v3277_v40, %v2921_v47 }
 0xbb8   : > { %v2926_v51 = vmul.f32 %v2925_v49, %v2909_v36 }
 0xbba   : > { %v2928_v53 = vmul.f32 %v2927_v48, %v2926_v51 }
 0xbbc   : > { %v2930_v54 = vadd.f32 %v2929_v52, %v2928_v53 }
 0xbbe   : > { %2931 = vst.msk [vmem:[%s3826_s7] sm:$0xf] %vm2897_vm3, %v2930_v54 }
 0xbbf   : > { %3455 = shalt.err (!%p3452_p13)
}
 0xbc0   : > { %3133 = dma.vmem_to_hbm [thread:$0]  (%p3705_p2), %s2948_s24, 64, %s2950_s30, %s2933_s10  }
 0xbc1 PF: > { %s4112_s4 = sld [smem:[#allocation17_spill]]  ;;  %p3161_p10 = scmp.ge.s32.totalorder %s3558_s28, 2 }
 0xbc3   : > { %p3153_p5 = pnand %p3161_p10, %p3713_p4 }
 0xbc5   : > { %p3154_p1 = pneg %p3153_p5 }
 0xbc7   : > { %s2961_s16 = sand.u32 1, %s4112_s4  }
 0xbc8   : > { %s2962_s6 = scalar_lea.sflag [#allocation5], %s2961_s16 }
 0xbc9   : > { %3513 = dma.done.wait (%p3154_p1), %s2962_s6, 64  }
 0xbca   : > { %3515 = vsyncadd (%p3154_p1), %s2962_s6, 4294967232  ;;  %s25_s28 = sadd.s32 1, %s3558_s28   ;;  %s4114_s13 = sld [smem:[#allocation25_spill]] }
 0xbcb   : > { %p22_p3 = scmp.ge.s32.totalorder %s25_s28, 8   ;;  %s4115_s24 = sld [smem:[#allocation19_spill]] }
 0xbcc   : > { %s4116_s25 = sld [smem:[#allocation20_spill]]  ;;  %s4119_s18 = smov %s3522_s19 }
 0xbcd   : > { %s4117_s26 = sld [smem:[#allocation21_spill]]  ;;  %s4120_s19 = smov %s3526_s20 }
 0xbce   : > { %s4118_s27 = sld [smem:[#allocation22_spill]]  ;;  %s4122_s21 = smov %s3534_s22 }
 0xbcf   : > { %s4123_s22 = smov %s3538_s23  ;;  %s4124_s23 = smov %s3759_s3 }
 0xbd0   : > { %s4121_s20 = smov %s4114_s13  ;;  %24 = sbr.rel (!%p22_p3) target bundleno = 17 (0x11), region = 124 }
 0xbd5   :  { %2968 = vsyncpa [#allocation4], 1 }
 0xbd6   :  { %2970 = vsyncpa [#allocation4 + $0x1], 1 }
 0xbd7   :  { %2971 = vsyncpa [#allocation7], 1 }
 0xbd8   :  { %2973 = vsyncpa [#allocation7 + $0x1], 1 }
 0xbd9   :  { %2974 = vsyncpa [#allocation10], 1 }
 0xbda   :  { %2975 = vsyncpa [#allocation5], 1 }
 0xbdb   :  { %2977 = vsyncpa [#allocation5 + $0x1], 1 }

</bundles_post_ra>
